<compile_context>
chip_gen: v7x
topology: tpu7x:2x2x1
jax: 0.10.0
libtpu: 0.0.40
codegen_flags: <defaults>
</compile_context>

<pallas_src>
import functools

import numpy as np
import jax
import jax.numpy as jnp
from jax.experimental import pallas as pl
from jax.experimental.pallas import tpu as pltpu

NUM_CLASSES = 20
ANCHOR_SIZE = [[1.19, 1.98], [2.79, 4.59], [4.53, 8.92], [8.06, 5.29], [10.32, 10.65]]
ANCHOR_N = len(ANCHOR_SIZE)                      # 5 anchors -> 5*(1+4+20) = 125 chans
STRIDE = 32
CH = 128                                          # small stand-in for resnet18's 512
M_CH = 64                                         # small stand-in for 256
LEAKY_SLOPE = 0.1                                 # nn.LeakyReLU(0.1) YOLO convention
ABC = ANCHOR_N * (1 + 4 + NUM_CLASSES)            # 125
ABC_PAD = 128                                     # lane-dense padded head width


def _round_up(v, m):
    return ((v + m - 1) // m) * m


@functools.lru_cache(maxsize=None)
def _vmem_limit_bytes():
    """Per-generation VMEM budget: ~96 MiB on v5e/v6e (128 MiB), ~48 MiB on v7x."""
    try:
        cap = int(pltpu.get_tpu_info().vmem_capacity_bytes)
    except Exception:
        cap = 64 * 1024 * 1024
    return int(min((cap * 3) // 4, 100 * 1024 * 1024))


# ----------------------------------------------------------------------------
# Pallas kernel 1: backbone stand-in (stride-32 patch embedding).
#   out[b] = leaky_relu(patches[b] @ w + b), K-reduction grid axis, f32 acc,
#   bf16 output emitted directly in the head's (B, HW, CH) layout.
# ----------------------------------------------------------------------------
def _patch_embed_kernel(x_ref, w_ref, b_ref, o_ref, acc_ref):
    @pl.when(pl.program_id(1) == 0)
    def _init():
        acc_ref[...] = jnp.zeros_like(acc_ref)

    acc_ref[...] += jnp.dot(x_ref[0], w_ref[...],
                            preferred_element_type=jnp.float32)

    @pl.when(pl.program_id(1) == pl.num_programs(1) - 1)
    def _finalize():
        y = acc_ref[...] + b_ref[...]              # bias + leaky in f32 (v5e safe)
        y = jnp.where(y > 0, y, LEAKY_SLOPE * y)
        o_ref[0] = y.astype(o_ref.dtype)


def pallas_patch_embed(patches, w, b):
    """patches: (B, HW, K) bf16; w: (K, CH) bf16; b: (1, CH) f32 -> (B, HW, CH) bf16."""
    B, HW, K = patches.shape
    N = w.shape[1]
    Kr = _round_up(K, 128)
    TK = Kr if Kr <= 2048 else 1024                # big K chunks (review item 5)
    Kp = _round_up(K, TK)
    if Kp != K:
        patches = jnp.pad(patches, ((0, 0), (0, 0), (0, Kp - K)))
        w = jnp.pad(w, ((0, Kp - K), (0, 0)))

    return pl.pallas_call(
        _patch_embed_kernel,
        out_shape=jax.ShapeDtypeStruct((B, HW, N), jnp.bfloat16),
        grid=(B, Kp // TK),
        in_specs=[
            pl.BlockSpec((1, HW, TK), lambda b_, k: (b_, 0, k)),
            pl.BlockSpec((TK, N), lambda b_, k: (k, 0)),
            pl.BlockSpec((1, N), lambda b_, k: (0, 0)),
        ],
        out_specs=pl.BlockSpec((1, HW, N), lambda b_, k: (b_, 0, 0)),
        scratch_shapes=[pltpu.VMEM((HW, N), jnp.float32)],
        compiler_params=pltpu.CompilerParams(
            dimension_semantics=("parallel", "arbitrary"),
            vmem_limit_bytes=_vmem_limit_bytes(),
        ),
    )(patches, w, b)


# ----------------------------------------------------------------------------
# Pallas kernel 2: fused post-backbone head (conv_set 1x1/3x3/1x1/3x3 ->
# branch 3x3 -> pred 1x1), one pallas_call per batch element, fully
# VMEM-resident.  3x3 convs: zero-padded taps via static row shifts + border
# masks assembled into one (HW, 9*Cin) operand -> single K=9*Cin MXU matmul.
# ----------------------------------------------------------------------------
def _make_head_kernel(HW, Wf):
    def kernel(x_ref, m_ref,
               w1_ref, b1_ref, w2_ref, b2_ref, w3_ref, b3_ref,
               w4_ref, b4_ref, w5_ref, b5_ref, w6_ref, b6_ref,
               o_ref, lhs_ref):
        def leaky(v):
            return jnp.where(v > 0, v, LEAKY_SLOPE * v)

        def conv1x1(h, w_r, b_r, act):
            y = jnp.dot(h.astype(jnp.bfloat16), w_r[...],
                        preferred_element_type=jnp.float32) + b_r[...]
            return leaky(y) if act else y

        def conv3x3(h, w_r, b_r):
            # h: (HW, Cin) f32.  For tap t=(dy,dx): shifted[p] = h[p + dy*Wf + dx]
            # when the 2-D neighbour is in-bounds, else 0 (precomputed mask +
            # explicit zeroing of rows with no in-range source).  All 9 taps are
            # written into lhs_ref columns [t*Cin, (t+1)*Cin) and contracted in
            # ONE MXU matmul against the (9*Cin, Cout) weight.
            Cin = h.shape[1]
            for t in range(9):
                dy, dx = t // 3 - 1, t % 3 - 1
                k = dy * Wf + dx
                lo = min(max(0, -k), HW)           # valid output-row range [lo, hi)
                hi = max(min(HW, HW - k), lo)
                c0 = t * Cin
                if lo > 0:
                    lhs_ref[0:lo, c0:c0 + Cin] = jnp.zeros((lo, Cin), jnp.float32)
                if hi < HW:
                    lhs_ref[hi:HW, c0:c0 + Cin] = jnp.zeros((HW - hi, Cin),
                                                            jnp.float32)
                if hi > lo:
                    msk = m_ref[t][lo:hi]          # (hi-lo, 1) f32 border mask
                    lhs_ref[lo:hi, c0:c0 + Cin] = h[lo + k:hi + k, :] * msk
            lhs = lhs_ref[:, 0:9 * Cin].astype(jnp.bfloat16)   # (HW, 9*Cin)
            y = jnp.dot(lhs, w_r[...],
                        preferred_element_type=jnp.float32) + b_r[...]
            return leaky(y)

        h = x_ref[0]                               # (HW, CH) bf16 from backbone
        h = conv1x1(h, w1_ref, b1_ref, True)       # conv_set 1x1 -> M_CH
        h = conv3x3(h, w2_ref, b2_ref)             # conv_set 3x3 -> CH
        h = conv1x1(h, w3_ref, b3_ref, True)       # conv_set 1x1 -> M_CH
        h = conv3x3(h, w4_ref, b4_ref)             # conv_set 3x3 -> CH
        h = conv3x3(h, w5_ref, b5_ref)             # branch (approx) 3x3 -> CH
        h = conv1x1(h, w6_ref, b6_ref, False)      # pred 1x1 -> 128 (padded)
        o_ref[0] = h.astype(o_ref.dtype)

    return kernel


def _make_tap_masks(Hf, Wf):
    """mask[t, y*Wf+x] = 1 iff (y+dy, x+dx) is inside the HfxWf grid (tap t=(dy,dx)).

    This reproduces the 3x3 conv's zero padding exactly, including the dx wrap
    across row boundaries of the flattened HW axis."""
    HW = Hf * Wf
    m = np.zeros((9, HW, 1), np.float32)
    for t in range(9):
        dy, dx = t // 3 - 1, t % 3 - 1
        for y in range(Hf):
            for x in range(Wf):
                if 0 <= y + dy < Hf and 0 <= x + dx < Wf:
                    m[t, y * Wf + x, 0] = 1.0
    return jnp.asarray(m)


def pallas_head(fp, masks, params, *, Wf):
    """fp: (B, HW, CH) bf16 -> (B, HW, ABC_PAD) f32."""
    B, HW, _ = fp.shape
    w1, b1 = params["cs1"]
    w2, b2 = params["cs2"]
    w3, b3 = params["cs3"]
    w4, b4 = params["cs4"]
    w5, b5 = params["br"]
    w6, b6 = params["pred"]

    _c2 = lambda b: (0, 0)
    _c3 = lambda b: (0, 0, 0)
    # NOTE: all weight/bias/mask index_maps are grid-invariant, so Pallas only
    # DMAs them once.  (pipeline_mode=pl.Buffered(1) would also drop the spare
    # buffer; skipped here since total weight VMEM is ~1 MiB.)
    in_specs = [
        pl.BlockSpec((1, HW, CH), lambda b: (b, 0, 0)),       # activation
        pl.BlockSpec(masks.shape, _c3),                       # (9, HW, 1) tap masks
        pl.BlockSpec(w1.shape, _c2), pl.BlockSpec(b1.shape, _c2),
        pl.BlockSpec(w2.shape, _c2), pl.BlockSpec(b2.shape, _c2),
        pl.BlockSpec(w3.shape, _c2), pl.BlockSpec(b3.shape, _c2),
        pl.BlockSpec(w4.shape, _c2), pl.BlockSpec(b4.shape, _c2),
        pl.BlockSpec(w5.shape, _c2), pl.BlockSpec(b5.shape, _c2),
        pl.BlockSpec(w6.shape, _c2), pl.BlockSpec(b6.shape, _c2),
    ]

    # TODO(synk): for B == 1 on v7x, split HW rows (with a 1-row halo) over a
    # second "parallel" grid axis so both TensorCores get work.
    return pl.pallas_call(
        _make_head_kernel(HW, Wf),
        out_shape=jax.ShapeDtypeStruct((B, HW, ABC_PAD), jnp.float32),
        grid=(B,),
        in_specs=in_specs,
        out_specs=pl.BlockSpec((1, HW, ABC_PAD), lambda b: (b, 0, 0)),
        scratch_shapes=[pltpu.VMEM((HW, 9 * CH), jnp.float32)],   # fused-tap LHS
        compiler_params=pltpu.CompilerParams(
            dimension_semantics=("parallel",),
            vmem_limit_bytes=_vmem_limit_bytes(),
        ),
    )(fp, masks, w1, b1, w2, b2, w3, b3, w4, b4, w5, b5, w6, b6)


# ----------------------------------------------------------------------------
# Deterministic parameter construction (synthetic; no checkpoint loading).
# Weights are stored once in kernel-ready form: bf16, padded, (1, N) f32 bias.
# ----------------------------------------------------------------------------
def init_params(key, in_ch):
    def dense(k, fan_in, fan_out):
        kw, kb = jax.random.split(k)
        scale = 1.0 / float(np.sqrt(fan_in))
        w = jax.random.normal(kw, (fan_in, fan_out), jnp.float32) * scale
        b = jax.random.normal(kb, (fan_out,), jnp.float32) * 0.01
        return w, b

    def prep(wb, pad_to=None):
        w, b = wb
        n = w.shape[1]
        if pad_to is not None and pad_to > n:
            w = jnp.pad(w, ((0, 0), (0, pad_to - n)))
            b = jnp.pad(b, (0, pad_to - n))
            n = pad_to
        return w.astype(jnp.bfloat16), b.astype(jnp.float32).reshape(1, n)

    ks = jax.random.split(key, 8)
    p = {}
    # backbone stand-in: stride-32 patch-embedding "conv" (32x32, stride 32)
    p["bb"] = prep(dense(ks[0], STRIDE * STRIDE * in_ch, CH))
    # conv_set(ch, m_ch, ch, 3): 1x1 -> 3x3 -> 1x1 -> 3x3, all LeakyReLU
    p["cs1"] = prep(dense(ks[1], CH, M_CH))
    p["cs2"] = prep(dense(ks[2], 9 * M_CH, CH))     # rows: [tap0 ch | ... | tap8 ch]
    p["cs3"] = prep(dense(ks[3], CH, M_CH))
    p["cs4"] = prep(dense(ks[4], 9 * M_CH, CH))
    # branch(ch): approximated as one 3x3 conv ch->ch + LeakyReLU
    p["br"] = prep(dense(ks[5], 9 * CH, CH))
    # pred: 1x1 conv ch -> anchor_n*(1+4+num_classes), no activation, padded to 128
    p["pred"] = prep(dense(ks[6], CH, ABC), pad_to=ABC_PAD)
    return p


# ----------------------------------------------------------------------------
# Forward pass (myYOLOv1.forward, trainable=True path)
# ----------------------------------------------------------------------------
def yolo_forward(x_nchw, params):
    B, C, H, W = x_nchw.shape
    Hf, Wf = H // STRIDE, W // STRIDE
    HW = Hf * Wf
    K = STRIDE * STRIDE * C

    # TODO(synk): resnet18 backbone is not defined in the provided snippet;
    # approximated by a single stride-32 patch-embedding conv (+LeakyReLU).
    # The gather is one fused XLA transpose emitting bf16 directly (no
    # separate f32 transpose + pad/cast passes).
    patches = (
        x_nchw.astype(jnp.bfloat16)
        .reshape(B, C, Hf, STRIDE, Wf, STRIDE)
        .transpose(0, 2, 4, 3, 5, 1)               # (B, Hf, Wf, ky, kx, C)
        .reshape(B, HW, K)
    )
    fp = pallas_patch_embed(patches, *params["bb"])          # (B, HW, CH) bf16

    # Fused head: conv_set -> branch -> pred, one pallas_call, VMEM-resident.
    masks = _make_tap_masks(Hf, Wf)
    head_out = pallas_head(fp, masks, params, Wf=Wf)         # (B, HW, 128) f32

    # PyTorch: prediction.permute(0,2,3,1).view(B, H*W, abC) -- already
    # channels-last here, so just drop the channel padding.
    prediction = head_out[:, :, :ABC]                        # (B, HW, 125)

    A, nc = ANCHOR_N, NUM_CLASSES
    obj_pred = prediction[:, :, :A].reshape(B, HW * A, 1)
    cls_pred = prediction[:, :, A:(1 + nc) * A].reshape(B, HW * A, nc)
    xywh_pred = prediction[:, :, (1 + nc) * A:].reshape(B, HW * A, 4)

    # trainable=True path: final_prediction = cat([obj, cls, xywh], -1)
    return jnp.concatenate([obj_pred, cls_pred, xywh_pred], axis=-1)


if __name__ == "__main__":
    key = jax.random.PRNGKey(0)
    k_x, k_p = jax.random.split(key)
    x = jax.random.normal(k_x, (2, 3, 64, 64), jnp.float32)  # NCHW, stride-32 -> 2x2 grid
    params = init_params(k_p, in_ch=3)

    out = jax.block_until_ready(jax.jit(yolo_forward)(x, params))

    expected = (2, (64 // STRIDE) * (64 // STRIDE) * ANCHOR_N, 1 + NUM_CLASSES + 4)
    assert out.shape == expected, (out.shape, expected)
    assert out.dtype == jnp.float32
    print("KERNEL_OK")
</pallas_src>

<mosaic_0001>
module attributes {stable_mosaic.version = 11 : i64} {
  func.func @_patch_embed_kernel(%arg0: i32, %arg1: i32, %arg2: memref<1x4x1024xbf16, #tpu.memory_space<vmem>>, %arg3: memref<1024x128xbf16, #tpu.memory_space<vmem>>, %arg4: memref<1x128xf32, #tpu.memory_space<vmem>>, %arg5: memref<1x4x128xbf16, #tpu.memory_space<vmem>>, %arg6: memref<4x128xf32, #tpu.memory_space<vmem>>) attributes {dimension_semantics = [#tpu.dimension_semantics<parallel>, #tpu.dimension_semantics<arbitrary>], iteration_bounds = array<i64: 2, 3>, scalar_prefetch = 0 : i64, scratch_operands = 1 : i64, tpu.core_type = #tpu.core_type<tc>, window_params = [{transform_indices = @transform_0, window_bounds = array<i64: 1, 4, 1024>}, {transform_indices = @transform_1, window_bounds = array<i64: 1024, 128>}, {pipeline_mode = #tpu.pipeline_mode<synchronous>, transform_indices = @transform_2, window_bounds = array<i64: 1, 128>}, {transform_indices = @transform_3, window_bounds = array<i64: 1, 4, 128>}]} {
    %c0_i32 = arith.constant 0 : i32
    %0 = arith.cmpi eq, %arg1, %c0_i32 : i32
    %1 = arith.extui %0 : i1 to i32
    %c0_i32_0 = arith.constant 0 : i32
    %2 = arith.cmpi ne, %1, %c0_i32_0 : i32
    scf.if %2 {
      %cst_10 = arith.constant 0.000000e+00 : f32
      %13 = vector.broadcast %cst_10 : f32 to vector<4x128xf32>
      %c0_11 = arith.constant 0 : index
      %c0_12 = arith.constant 0 : index
      %14 = vector.load %arg6[%c0_11, %c0_12] : memref<4x128xf32, #tpu.memory_space<vmem>>, vector<4x128xf32>
      tpu.vector_store %arg6[%c0_11, %c0_12], %13 {strides = array<i32>} : memref<4x128xf32, #tpu.memory_space<vmem>>, vector<4x128xf32>,
    } else {
    }
    %c0 = arith.constant 0 : index
    %c0_1 = arith.constant 0 : index
    %3 = vector.load %arg6[%c0, %c0_1] : memref<4x128xf32, #tpu.memory_space<vmem>>, vector<4x128xf32>
    %c0_2 = arith.constant 0 : index
    %c0_3 = arith.constant 0 : index
    %c0_4 = arith.constant 0 : index
    %4 = vector.load %arg2[%c0_2, %c0_3, %c0_4] : memref<1x4x1024xbf16, #tpu.memory_space<vmem>>, vector<1x4x1024xbf16>
    %5 = vector.shape_cast %4 : vector<1x4x1024xbf16> to vector<4x1024xbf16>
    %c0_5 = arith.constant 0 : index
    %c0_6 = arith.constant 0 : index
    %6 = vector.load %arg3[%c0_5, %c0_6] : memref<1024x128xbf16, #tpu.memory_space<vmem>>, vector<1024x128xbf16>
    %cst = arith.constant dense<0.000000e+00> : vector<4x128xf32>
    %7 = tpu.matmul %5, %6, %cst {dimension_numbers = #tpu.dot_dimension_numbers<[1], [0], [0], [1], [0, 0, 1, 1], [], []>} : vector<4x1024xbf16>, vector<1024x128xbf16>, vector<4x128xf32> -> vector<4x128xf32>
    %8 = arith.addf %3, %7 : vector<4x128xf32>
    %c0_7 = arith.constant 0 : index
    %c0_8 = arith.constant 0 : index
    %9 = vector.load %arg6[%c0_7, %c0_8] : memref<4x128xf32, #tpu.memory_space<vmem>>, vector<4x128xf32>
    tpu.vector_store %arg6[%c0_7, %c0_8], %8 {strides = array<i32>} : memref<4x128xf32, #tpu.memory_space<vmem>>, vector<4x128xf32>,
    %c2_i32 = arith.constant 2 : i32
    %10 = arith.cmpi eq, %arg1, %c2_i32 : i32
    %11 = arith.extui %10 : i1 to i32
    %c0_i32_9 = arith.constant 0 : i32
    %12 = arith.cmpi ne, %11, %c0_i32_9 : i32
    scf.if %12 {
      %c0_10 = arith.constant 0 : index
      %c0_11 = arith.constant 0 : index
      %13 = vector.load %arg6[%c0_10, %c0_11] : memref<4x128xf32, #tpu.memory_space<vmem>>, vector<4x128xf32>
      %c0_12 = arith.constant 0 : index
      %c0_13 = arith.constant 0 : index
      %14 = vector.load %arg4[%c0_12, %c0_13] : memref<1x128xf32, #tpu.memory_space<vmem>>, vector<1x128xf32>
      %15 = vector.broadcast %14 : vector<1x128xf32> to vector<4x128xf32>
      %16 = arith.addf %13, %15 : vector<4x128xf32>
      %cst_14 = arith.constant 0.000000e+00 : f32
      %17 = vector.broadcast %cst_14 : f32 to vector<4x128xf32>
      %18 = arith.cmpf ogt, %16, %17 : vector<4x128xf32>
      %cst_15 = arith.constant 1.000000e-01 : f32
      %19 = vector.broadcast %cst_15 : f32 to vector<4x128xf32>
      %20 = arith.mulf %19, %16 : vector<4x128xf32>
      %21 = arith.select %18, %16, %20 : vector<4x128xi1>, vector<4x128xf32>
      %22 = arith.truncf %21 : vector<4x128xf32> to vector<4x128xbf16>
      %c0_16 = arith.constant 0 : index
      %c0_17 = arith.constant 0 : index
      %c0_18 = arith.constant 0 : index
      %23 = vector.load %arg5[%c0_16, %c0_17, %c0_18] : memref<1x4x128xbf16, #tpu.memory_space<vmem>>, vector<1x4x128xbf16>
      %24 = vector.shape_cast %23 : vector<1x4x128xbf16> to vector<4x128xbf16>
      %25 = vector.shape_cast %22 : vector<4x128xbf16> to vector<1x4x128xbf16>
      tpu.vector_store %arg5[%c0_16, %c0_17, %c0_18], %25 {strides = array<i32>} : memref<1x4x128xbf16, #tpu.memory_space<vmem>>, vector<1x4x128xbf16>,
    } else {
    }
    return
  }
  func.func @transform_0(%arg0: i32, %arg1: i32) -> (i32, i32, i32) {
    %c0_i32 = arith.constant 0 : i32
    %c0_i32_0 = arith.constant 0 : i32
    return %arg0, %c0_i32, %arg1 : i32, i32, i32
  }
  func.func @transform_1(%arg0: i32, %arg1: i32) -> (i32, i32) {
    %c0_i32 = arith.constant 0 : i32
    %c0_i32_0 = arith.constant 0 : i32
    return %arg1, %c0_i32 : i32, i32
  }
  func.func @transform_2(%arg0: i32, %arg1: i32) -> (i32, i32) {
    %c0_i32 = arith.constant 0 : i32
    %c0_i32_0 = arith.constant 0 : i32
    %c0_i32_1 = arith.constant 0 : i32
    return %c0_i32, %c0_i32_0 : i32, i32
  }
  func.func @transform_3(%arg0: i32, %arg1: i32) -> (i32, i32, i32) {
    %c0_i32 = arith.constant 0 : i32
    %c0_i32_0 = arith.constant 0 : i32
    %c0_i32_1 = arith.constant 0 : i32
    return %arg0, %c0_i32, %c0_i32_0 : i32, i32, i32
  }
}

module attributes {stable_mosaic.version = 11 : i64} {
  func.func @kernel(%arg0: i32, %arg1: memref<1x4x128xbf16, #tpu.memory_space<vmem>>, %arg2: memref<9x4x1xf32, #tpu.memory_space<vmem>>, %arg3: memref<128x64xbf16, #tpu.memory_space<vmem>>, %arg4: memref<1x64xf32, #tpu.memory_space<vmem>>, %arg5: memref<576x128xbf16, #tpu.memory_space<vmem>>, %arg6: memref<1x128xf32, #tpu.memory_space<vmem>>, %arg7: memref<128x64xbf16, #tpu.memory_space<vmem>>, %arg8: memref<1x64xf32, #tpu.memory_space<vmem>>, %arg9: memref<576x128xbf16, #tpu.memory_space<vmem>>, %arg10: memref<1x128xf32, #tpu.memory_space<vmem>>, %arg11: memref<1152x128xbf16, #tpu.memory_space<vmem>>, %arg12: memref<1x128xf32, #tpu.memory_space<vmem>>, %arg13: memref<128x128xbf16, #tpu.memory_space<vmem>>, %arg14: memref<1x128xf32, #tpu.memory_space<vmem>>, %arg15: memref<1x4x128xf32, #tpu.memory_space<vmem>>, %arg16: memref<4x1152xf32, #tpu.memory_space<vmem>>) attributes {dimension_semantics = [#tpu.dimension_semantics<parallel>], iteration_bounds = array<i64: 2>, scalar_prefetch = 0 : i64, scratch_operands = 1 : i64, tpu.core_type = #tpu.core_type<tc>, window_params = [{transform_indices = @transform_0, window_bounds = array<i64: 1, 4, 128>}, {pipeline_mode = #tpu.pipeline_mode<synchronous>, transform_indices = @transform_1, window_bounds = array<i64: 9, 4, 1>}, {pipeline_mode = #tpu.pipeline_mode<synchronous>, transform_indices = @transform_2, window_bounds = array<i64: 128, 64>}, {pipeline_mode = #tpu.pipeline_mode<synchronous>, transform_indices = @transform_3, window_bounds = array<i64: 1, 64>}, {pipeline_mode = #tpu.pipeline_mode<synchronous>, transform_indices = @transform_4, window_bounds = array<i64: 576, 128>}, {pipeline_mode = #tpu.pipeline_mode<synchronous>, transform_indices = @transform_5, window_bounds = array<i64: 1, 128>}, {pipeline_mode = #tpu.pipeline_mode<synchronous>, transform_indices = @transform_6, window_bounds = array<i64: 128, 64>}, {pipeline_mode = #tpu.pipeline_mode<synchronous>, transform_indices = @transform_7, window_bounds = array<i64: 1, 64>}, {pipeline_mode = #tpu.pipeline_mode<synchronous>, transform_indices = @transform_8, window_bounds = array<i64: 576, 128>}, {pipeline_mode = #tpu.pipeline_mode<synchronous>, transform_indices = @transform_9, window_bounds = array<i64: 1, 128>}, {pipeline_mode = #tpu.pipeline_mode<synchronous>, transform_indices = @transform_10, window_bounds = array<i64: 1152, 128>}, {pipeline_mode = #tpu.pipeline_mode<synchronous>, transform_indices = @transform_11, window_bounds = array<i64: 1, 128>}, {pipeline_mode = #tpu.pipeline_mode<synchronous>, transform_indices = @transform_12, window_bounds = array<i64: 128, 128>}, {pipeline_mode = #tpu.pipeline_mode<synchronous>, transform_indices = @transform_13, window_bounds = array<i64: 1, 128>}, {transform_indices = @transform_14, window_bounds = array<i64: 1, 4, 128>}]} {
    %c0 = arith.constant 0 : index
    %c0_0 = arith.constant 0 : index
    %c0_1 = arith.constant 0 : index
    %0 = vector.load %arg1[%c0, %c0_0, %c0_1] : memref<1x4x128xbf16, #tpu.memory_space<vmem>>, vector<1x4x128xbf16>
    %1 = vector.shape_cast %0 : vector<1x4x128xbf16> to vector<4x128xbf16>
    %c0_2 = arith.constant 0 : index
    %c0_3 = arith.constant 0 : index
    %2 = vector.load %arg3[%c0_2, %c0_3] : memref<128x64xbf16, #tpu.memory_space<vmem>>, vector<128x64xbf16>
    %cst = arith.constant dense<0.000000e+00> : vector<4x64xf32>
    %3 = tpu.matmul %1, %2, %cst {dimension_numbers = #tpu.dot_dimension_numbers<[1], [0], [0], [1], [0, 0, 1, 1], [], []>} : vector<4x128xbf16>, vector<128x64xbf16>, vector<4x64xf32> -> vector<4x64xf32>
    %c0_4 = arith.constant 0 : index
    %c0_5 = arith.constant 0 : index
    %4 = vector.load %arg4[%c0_4, %c0_5] : memref<1x64xf32, #tpu.memory_space<vmem>>, vector<1x64xf32>
    %5 = vector.broadcast %4 : vector<1x64xf32> to vector<4x64xf32>
    %6 = arith.addf %3, %5 : vector<4x64xf32>
    %cst_6 = arith.constant 0.000000e+00 : f32
    %7 = vector.broadcast %cst_6 : f32 to vector<4x64xf32>
    %8 = arith.cmpf ogt, %6, %7 : vector<4x64xf32>
    %cst_7 = arith.constant 1.000000e-01 : f32
    %9 = vector.broadcast %cst_7 : f32 to vector<4x64xf32>
    %10 = arith.mulf %9, %6 : vector<4x64xf32>
    %11 = arith.select %8, %6, %10 : vector<4x64xi1>, vector<4x64xf32>
    %cst_8 = arith.constant 0.000000e+00 : f32
    %12 = vector.broadcast %cst_8 : f32 to vector<3x64xf32>
    %c0_9 = arith.constant 0 : index
    %c0_10 = arith.constant 0 : index
    %13 = vector.load %arg16[%c0_9, %c0_10] : memref<4x1152xf32, #tpu.memory_space<vmem>>, vector<3x64xf32>
    tpu.vector_store %arg16[%c0_9, %c0_10], %12 {strides = array<i32>} : memref<4x1152xf32, #tpu.memory_space<vmem>>, vector<3x64xf32>,
    %c0_11 = arith.constant 0 : index
    %c0_12 = arith.constant 0 : index
    %c0_13 = arith.constant 0 : index
    %14 = vector.load %arg2[%c0_11, %c0_12, %c0_13] : memref<9x4x1xf32, #tpu.memory_space<vmem>>, vector<1x4x1xf32>
    %15 = vector.shape_cast %14 : vector<1x4x1xf32> to vector<4x1xf32>
    %16 = vector.extract_strided_slice %15 {offsets = [3, 0], sizes = [1, 1], strides = [1, 1]} : vector<4x1xf32> to vector<1x1xf32>
    %17 = vector.extract_strided_slice %11 {offsets = [0, 0], sizes = [1, 64], strides = [1, 1]} : vector<4x64xf32> to vector<1x64xf32>
    %18 = vector.broadcast %16 : vector<1x1xf32> to vector<1x64xf32>
    %19 = arith.mulf %17, %18 : vector<1x64xf32>
    %c3 = arith.constant 3 : index
    %c0_14 = arith.constant 0 : index
    %20 = vector.load %arg16[%c3, %c0_14] : memref<4x1152xf32, #tpu.memory_space<vmem>>, vector<1x64xf32>
    tpu.vector_store %arg16[%c3, %c0_14], %19 {strides = array<i32>} : memref<4x1152xf32, #tpu.memory_space<vmem>>, vector<1x64xf32>,
    %cst_15 = arith.constant 0.000000e+00 : f32
    %21 = vector.broadcast %cst_15 : f32 to vector<2x64xf32>
    %c0_16 = arith.constant 0 : index
    %c64 = arith.constant 64 : index
    %22 = vector.load %arg16[%c0_16, %c64] : memref<4x1152xf32, #tpu.memory_space<vmem>>, vector<2x64xf32>
    tpu.vector_store %arg16[%c0_16, %c64], %21 {strides = array<i32>} : memref<4x1152xf32, #tpu.memory_space<vmem>>, vector<2x64xf32>,
    %c1 = arith.constant 1 : index
    %c0_17 = arith.constant 0 : index
    %c0_18 = arith.constant 0 : index
    %23 = vector.load %arg2[%c1, %c0_17, %c0_18] : memref<9x4x1xf32, #tpu.memory_space<vmem>>, vector<1x4x1xf32>
    %24 = vector.shape_cast %23 : vector<1x4x1xf32> to vector<4x1xf32>
    %25 = vector.extract_strided_slice %24 {offsets = [2, 0], sizes = [2, 1], strides = [1, 1]} : vector<4x1xf32> to vector<2x1xf32>
    %26 = vector.extract_strided_slice %11 {offsets = [0, 0], sizes = [2, 64], strides = [1, 1]} : vector<4x64xf32> to vector<2x64xf32>
    %27 = vector.broadcast %25 : vector<2x1xf32> to vector<2x64xf32>
    %28 = arith.mulf %26, %27 : vector<2x64xf32>
    %c2 = arith.constant 2 : index
    %c64_19 = arith.constant 64 : index
    %29 = vector.load %arg16[%c2, %c64_19] : memref<4x1152xf32, #tpu.memory_space<vmem>>, vector<2x64xf32>
    tpu.vector_store %arg16[%c2, %c64_19], %28 {strides = array<i32>} : memref<4x1152xf32, #tpu.memory_space<vmem>>, vector<2x64xf32>,
    %cst_20 = arith.constant 0.000000e+00 : f32
    %30 = vector.broadcast %cst_20 : f32 to vector<1x64xf32>
    %c0_21 = arith.constant 0 : index
    %c128 = arith.constant 128 : index
    %31 = vector.load %arg16[%c0_21, %c128] : memref<4x1152xf32, #tpu.memory_space<vmem>>, vector<1x64xf32>
    tpu.vector_store %arg16[%c0_21, %c128], %30 {strides = array<i32>} : memref<4x1152xf32, #tpu.memory_space<vmem>>, vector<1x64xf32>,
    %c2_22 = arith.constant 2 : index
    %c0_23 = arith.constant 0 : index
    %c0_24 = arith.constant 0 : index
    %32 = vector.load %arg2[%c2_22, %c0_23, %c0_24] : memref<9x4x1xf32, #tpu.memory_space<vmem>>, vector<1x4x1xf32>
    %33 = vector.shape_cast %32 : vector<1x4x1xf32> to vector<4x1xf32>
    %34 = vector.extract_strided_slice %33 {offsets = [1, 0], sizes = [3, 1], strides = [1, 1]} : vector<4x1xf32> to vector<3x1xf32>
    %35 = vector.extract_strided_slice %11 {offsets = [0, 0], sizes = [3, 64], strides = [1, 1]} : vector<4x64xf32> to vector<3x64xf32>
    %36 = vector.broadcast %34 : vector<3x1xf32> to vector<3x64xf32>
    %37 = arith.mulf %35, %36 : vector<3x64xf32>
    %c1_25 = arith.constant 1 : index
    %c128_26 = arith.constant 128 : index
    %38 = vector.load %arg16[%c1_25, %c128_26] : memref<4x1152xf32, #tpu.memory_space<vmem>>, vector<3x64xf32>
    tpu.vector_store %arg16[%c1_25, %c128_26], %37 {strides = array<i32>} : memref<4x1152xf32, #tpu.memory_space<vmem>>, vector<3x64xf32>,
    %cst_27 = arith.constant 0.000000e+00 : f32
    %39 = vector.broadcast %cst_27 : f32 to vector<1x64xf32>
    %c0_28 = arith.constant 0 : index
    %c192 = arith.constant 192 : index
    %40 = vector.load %arg16[%c0_28, %c192] : memref<4x1152xf32, #tpu.memory_space<vmem>>, vector<1x64xf32>
    tpu.vector_store %arg16[%c0_28, %c192], %39 {strides = array<i32>} : memref<4x1152xf32, #tpu.memory_space<vmem>>, vector<1x64xf32>,
    %c3_29 = arith.constant 3 : index
    %c0_30 = arith.constant 0 : index
    %c0_31 = arith.constant 0 : index
    %41 = vector.load %arg2[%c3_29, %c0_30, %c0_31] : memref<9x4x1xf32, #tpu.memory_space<vmem>>, vector<1x4x1xf32>
    %42 = vector.shape_cast %41 : vector<1x4x1xf32> to vector<4x1xf32>
    %43 = vector.extract_strided_slice %42 {offsets = [1, 0], sizes = [3, 1], strides = [1, 1]} : vector<4x1xf32> to vector<3x1xf32>
    %44 = vector.extract_strided_slice %11 {offsets = [0, 0], sizes = [3, 64], strides = [1, 1]} : vector<4x64xf32> to vector<3x64xf32>
    %45 = vector.broadcast %43 : vector<3x1xf32> to vector<3x64xf32>
    %46 = arith.mulf %44, %45 : vector<3x64xf32>
    %c1_32 = arith.constant 1 : index
    %c192_33 = arith.constant 192 : index
    %47 = vector.load %arg16[%c1_32, %c192_33] : memref<4x1152xf32, #tpu.memory_space<vmem>>, vector<3x64xf32>
    tpu.vector_store %arg16[%c1_32, %c192_33], %46 {strides = array<i32>} : memref<4x1152xf32, #tpu.memory_space<vmem>>, vector<3x64xf32>,
    %c4 = arith.constant 4 : index
    %c0_34 = arith.constant 0 : index
    %c0_35 = arith.constant 0 : index
    %48 = vector.load %arg2[%c4, %c0_34, %c0_35] : memref<9x4x1xf32, #tpu.memory_space<vmem>>, vector<1x4x1xf32>
    %49 = vector.shape_cast %48 : vector<1x4x1xf32> to vector<4x1xf32>
    %50 = vector.broadcast %49 : vector<4x1xf32> to vector<4x64xf32>
    %51 = arith.mulf %11, %50 : vector<4x64xf32>
    %c0_36 = arith.constant 0 : index
    %c256 = arith.constant 256 : index
    %52 = vector.load %arg16[%c0_36, %c256] : memref<4x1152xf32, #tpu.memory_space<vmem>>, vector<4x64xf32>
    tpu.vector_store %arg16[%c0_36, %c256], %51 {strides = array<i32>} : memref<4x1152xf32, #tpu.memory_space<vmem>>, vector<4x64xf32>,
    %cst_37 = arith.constant 0.000000e+00 : f32
    %53 = vector.broadcast %cst_37 : f32 to vector<1x64xf32>
    %c3_38 = arith.constant 3 : index
    %c320 = arith.constant 320 : index
    %54 = vector.load %arg16[%c3_38, %c320] : memref<4x1152xf32, #tpu.memory_space<vmem>>, vector<1x64xf32>
    tpu.vector_store %arg16[%c3_38, %c320], %53 {strides = array<i32>} : memref<4x1152xf32, #tpu.memory_space<vmem>>, vector<1x64xf32>,
    %c5 = arith.constant 5 : index
    %c0_39 = arith.constant 0 : index
    %c0_40 = arith.constant 0 : index
    %55 = vector.load %arg2[%c5, %c0_39, %c0_40] : memref<9x4x1xf32, #tpu.memory_space<vmem>>, vector<1x4x1xf32>
    %56 = vector.shape_cast %55 : vector<1x4x1xf32> to vector<4x1xf32>
    %57 = vector.extract_strided_slice %56 {offsets = [0, 0], sizes = [3, 1], strides = [1, 1]} : vector<4x1xf32> to vector<3x1xf32>
    %58 = vector.extract_strided_slice %11 {offsets = [1, 0], sizes = [3, 64], strides = [1, 1]} : vector<4x64xf32> to vector<3x64xf32>
    %59 = vector.broadcast %57 : vector<3x1xf32> to vector<3x64xf32>
    %60 = arith.mulf %58, %59 : vector<3x64xf32>
    %c0_41 = arith.constant 0 : index
    %c320_42 = arith.constant 320 : index
    %61 = vector.load %arg16[%c0_41, %c320_42] : memref<4x1152xf32, #tpu.memory_space<vmem>>, vector<3x64xf32>
    tpu.vector_store %arg16[%c0_41, %c320_42], %60 {strides = array<i32>} : memref<4x1152xf32, #tpu.memory_space<vmem>>, vector<3x64xf32>,
    %cst_43 = arith.constant 0.000000e+00 : f32
    %62 = vector.broadcast %cst_43 : f32 to vector<1x64xf32>
    %c3_44 = arith.constant 3 : index
    %c384 = arith.constant 384 : index
    %63 = vector.load %arg16[%c3_44, %c384] : memref<4x1152xf32, #tpu.memory_space<vmem>>, vector<1x64xf32>
    tpu.vector_store %arg16[%c3_44, %c384], %62 {strides = array<i32>} : memref<4x1152xf32, #tpu.memory_space<vmem>>, vector<1x64xf32>,
    %c6 = arith.constant 6 : index
    %c0_45 = arith.constant 0 : index
    %c0_46 = arith.constant 0 : index
    %64 = vector.load %arg2[%c6, %c0_45, %c0_46] : memref<9x4x1xf32, #tpu.memory_space<vmem>>, vector<1x4x1xf32>
    %65 = vector.shape_cast %64 : vector<1x4x1xf32> to vector<4x1xf32>
    %66 = vector.extract_strided_slice %65 {offsets = [0, 0], sizes = [3, 1], strides = [1, 1]} : vector<4x1xf32> to vector<3x1xf32>
    %67 = vector.extract_strided_slice %11 {offsets = [1, 0], sizes = [3, 64], strides = [1, 1]} : vector<4x64xf32> to vector<3x64xf32>
    %68 = vector.broadcast %66 : vector<3x1xf32> to vector<3x64xf32>
    %69 = arith.mulf %67, %68 : vector<3x64xf32>
    %c0_47 = arith.constant 0 : index
    %c384_48 = arith.constant 384 : index
    %70 = vector.load %arg16[%c0_47, %c384_48] : memref<4x1152xf32, #tpu.memory_space<vmem>>, vector<3x64xf32>
    tpu.vector_store %arg16[%c0_47, %c384_48], %69 {strides = array<i32>} : memref<4x1152xf32, #tpu.memory_space<vmem>>, vector<3x64xf32>,
    %cst_49 = arith.constant 0.000000e+00 : f32
    %71 = vector.broadcast %cst_49 : f32 to vector<2x64xf32>
    %c2_50 = arith.constant 2 : index
    %c448 = arith.constant 448 : index
    %72 = vector.load %arg16[%c2_50, %c448] : memref<4x1152xf32, #tpu.memory_space<vmem>>, vector<2x64xf32>
    tpu.vector_store %arg16[%c2_50, %c448], %71 {strides = array<i32>} : memref<4x1152xf32, #tpu.memory_space<vmem>>, vector<2x64xf32>,
    %c7 = arith.constant 7 : index
    %c0_51 = arith.constant 0 : index
    %c0_52 = arith.constant 0 : index
    %73 = vector.load %arg2[%c7, %c0_51, %c0_52] : memref<9x4x1xf32, #tpu.memory_space<vmem>>, vector<1x4x1xf32>
    %74 = vector.shape_cast %73 : vector<1x4x1xf32> to vector<4x1xf32>
    %75 = vector.extract_strided_slice %74 {offsets = [0, 0], sizes = [2, 1], strides = [1, 1]} : vector<4x1xf32> to vector<2x1xf32>
    %76 = vector.extract_strided_slice %11 {offsets = [2, 0], sizes = [2, 64], strides = [1, 1]} : vector<4x64xf32> to vector<2x64xf32>
    %77 = vector.broadcast %75 : vector<2x1xf32> to vector<2x64xf32>
    %78 = arith.mulf %76, %77 : vector<2x64xf32>
    %c0_53 = arith.constant 0 : index
    %c448_54 = arith.constant 448 : index
    %79 = vector.load %arg16[%c0_53, %c448_54] : memref<4x1152xf32, #tpu.memory_space<vmem>>, vector<2x64xf32>
    tpu.vector_store %arg16[%c0_53, %c448_54], %78 {strides = array<i32>} : memref<4x1152xf32, #tpu.memory_space<vmem>>, vector<2x64xf32>,
    %cst_55 = arith.constant 0.000000e+00 : f32
    %80 = vector.broadcast %cst_55 : f32 to vector<3x64xf32>
    %c1_56 = arith.constant 1 : index
    %c512 = arith.constant 512 : index
    %81 = vector.load %arg16[%c1_56, %c512] : memref<4x1152xf32, #tpu.memory_space<vmem>>, vector<3x64xf32>
    tpu.vector_store %arg16[%c1_56, %c512], %80 {strides = array<i32>} : memref<4x1152xf32, #tpu.memory_space<vmem>>, vector<3x64xf32>,
    %c8 = arith.constant 8 : index
    %c0_57 = arith.constant 0 : index
    %c0_58 = arith.constant 0 : index
    %82 = vector.load %arg2[%c8, %c0_57, %c0_58] : memref<9x4x1xf32, #tpu.memory_space<vmem>>, vector<1x4x1xf32>
    %83 = vector.shape_cast %82 : vector<1x4x1xf32> to vector<4x1xf32>
    %84 = vector.extract_strided_slice %83 {offsets = [0, 0], sizes = [1, 1], strides = [1, 1]} : vector<4x1xf32> to vector<1x1xf32>
    %85 = vector.extract_strided_slice %11 {offsets = [3, 0], sizes = [1, 64], strides = [1, 1]} : vector<4x64xf32> to vector<1x64xf32>
    %86 = vector.broadcast %84 : vector<1x1xf32> to vector<1x64xf32>
    %87 = arith.mulf %85, %86 : vector<1x64xf32>
    %c0_59 = arith.constant 0 : index
    %c512_60 = arith.constant 512 : index
    %88 = vector.load %arg16[%c0_59, %c512_60] : memref<4x1152xf32, #tpu.memory_space<vmem>>, vector<1x64xf32>
    tpu.vector_store %arg16[%c0_59, %c512_60], %87 {strides = array<i32>} : memref<4x1152xf32, #tpu.memory_space<vmem>>, vector<1x64xf32>,
    %c0_61 = arith.constant 0 : index
    %c0_62 = arith.constant 0 : index
    %89 = vector.load %arg16[%c0_61, %c0_62] : memref<4x1152xf32, #tpu.memory_space<vmem>>, vector<4x576xf32>
    %90 = arith.truncf %89 : vector<4x576xf32> to vector<4x576xbf16>
    %c0_63 = arith.constant 0 : index
    %c0_64 = arith.constant 0 : index
    %91 = vector.load %arg5[%c0_63, %c0_64] : memref<576x128xbf16, #tpu.memory_space<vmem>>, vector<576x128xbf16>
    %cst_65 = arith.constant dense<0.000000e+00> : vector<4x128xf32>
    %92 = tpu.matmul %90, %91, %cst_65 {dimension_numbers = #tpu.dot_dimension_numbers<[1], [0], [0], [1], [0, 0, 1, 1], [], []>} : vector<4x576xbf16>, vector<576x128xbf16>, vector<4x128xf32> -> vector<4x128xf32>
    %c0_66 = arith.constant 0 : index
    %c0_67 = arith.constant 0 : index
    %93 = vector.load %arg6[%c0_66, %c0_67] : memref<1x128xf32, #tpu.memory_space<vmem>>, vector<1x128xf32>
    %94 = vector.broadcast %93 : vector<1x128xf32> to vector<4x128xf32>
    %95 = arith.addf %92, %94 : vector<4x128xf32>
    %cst_68 = arith.constant 0.000000e+00 : f32
    %96 = vector.broadcast %cst_68 : f32 to vector<4x128xf32>
    %97 = arith.cmpf ogt, %95, %96 : vector<4x128xf32>
    %cst_69 = arith.constant 1.000000e-01 : f32
    %98 = vector.broadcast %cst_69 : f32 to vector<4x128xf32>
    %99 = arith.mulf %98, %95 : vector<4x128xf32>
    %100 = arith.select %97, %95, %99 : vector<4x128xi1>, vector<4x128xf32>
    %101 = arith.truncf %100 : vector<4x128xf32> to vector<4x128xbf16>
    %c0_70 = arith.constant 0 : index
    %c0_71 = arith.constant 0 : index
    %102 = vector.load %arg7[%c0_70, %c0_71] : memref<128x64xbf16, #tpu.memory_space<vmem>>, vector<128x64xbf16>
    %cst_72 = arith.constant dense<0.000000e+00> : vector<4x64xf32>
    %103 = tpu.matmul %101, %102, %cst_72 {dimension_numbers = #tpu.dot_dimension_numbers<[1], [0], [0], [1], [0, 0, 1, 1], [], []>} : vector<4x128xbf16>, vector<128x64xbf16>, vector<4x64xf32> -> vector<4x64xf32>
    %c0_73 = arith.constant 0 : index
    %c0_74 = arith.constant 0 : index
    %104 = vector.load %arg8[%c0_73, %c0_74] : memref<1x64xf32, #tpu.memory_space<vmem>>, vector<1x64xf32>
    %105 = vector.broadcast %104 : vector<1x64xf32> to vector<4x64xf32>
    %106 = arith.addf %103, %105 : vector<4x64xf32>
    %cst_75 = arith.constant 0.000000e+00 : f32
    %107 = vector.broadcast %cst_75 : f32 to vector<4x64xf32>
    %108 = arith.cmpf ogt, %106, %107 : vector<4x64xf32>
    %cst_76 = arith.constant 1.000000e-01 : f32
    %109 = vector.broadcast %cst_76 : f32 to vector<4x64xf32>
    %110 = arith.mulf %109, %106 : vector<4x64xf32>
    %111 = arith.select %108, %106, %110 : vector<4x64xi1>, vector<4x64xf32>
    %cst_77 = arith.constant 0.000000e+00 : f32
    %112 = vector.broadcast %cst_77 : f32 to vector<3x64xf32>
    %c0_78 = arith.constant 0 : index
    %c0_79 = arith.constant 0 : index
    %113 = vector.load %arg16[%c0_78, %c0_79] : memref<4x1152xf32, #tpu.memory_space<vmem>>, vector<3x64xf32>
    tpu.vector_store %arg16[%c0_78, %c0_79], %112 {strides = array<i32>} : memref<4x1152xf32, #tpu.memory_space<vmem>>, vector<3x64xf32>,
    %c0_80 = arith.constant 0 : index
    %c0_81 = arith.constant 0 : index
    %c0_82 = arith.constant 0 : index
    %114 = vector.load %arg2[%c0_80, %c0_81, %c0_82] : memref<9x4x1xf32, #tpu.memory_space<vmem>>, vector<1x4x1xf32>
    %115 = vector.shape_cast %114 : vector<1x4x1xf32> to vector<4x1xf32>
    %116 = vector.extract_strided_slice %115 {offsets = [3, 0], sizes = [1, 1], strides = [1, 1]} : vector<4x1xf32> to vector<1x1xf32>
    %117 = vector.extract_strided_slice %111 {offsets = [0, 0], sizes = [1, 64], strides = [1, 1]} : vector<4x64xf32> to vector<1x64xf32>
    %118 = vector.broadcast %116 : vector<1x1xf32> to vector<1x64xf32>
    %119 = arith.mulf %117, %118 : vector<1x64xf32>
    %c3_83 = arith.constant 3 : index
    %c0_84 = arith.constant 0 : index
    %120 = vector.load %arg16[%c3_83, %c0_84] : memref<4x1152xf32, #tpu.memory_space<vmem>>, vector<1x64xf32>
    tpu.vector_store %arg16[%c3_83, %c0_84], %119 {strides = array<i32>} : memref<4x1152xf32, #tpu.memory_space<vmem>>, vector<1x64xf32>,
    %cst_85 = arith.constant 0.000000e+00 : f32
    %121 = vector.broadcast %cst_85 : f32 to vector<2x64xf32>
    %c0_86 = arith.constant 0 : index
    %c64_87 = arith.constant 64 : index
    %122 = vector.load %arg16[%c0_86, %c64_87] : memref<4x1152xf32, #tpu.memory_space<vmem>>, vector<2x64xf32>
    tpu.vector_store %arg16[%c0_86, %c64_87], %121 {strides = array<i32>} : memref<4x1152xf32, #tpu.memory_space<vmem>>, vector<2x64xf32>,
    %c1_88 = arith.constant 1 : index
    %c0_89 = arith.constant 0 : index
    %c0_90 = arith.constant 0 : index
    %123 = vector.load %arg2[%c1_88, %c0_89, %c0_90] : memref<9x4x1xf32, #tpu.memory_space<vmem>>, vector<1x4x1xf32>
    %124 = vector.shape_cast %123 : vector<1x4x1xf32> to vector<4x1xf32>
    %125 = vector.extract_strided_slice %124 {offsets = [2, 0], sizes = [2, 1], strides = [1, 1]} : vector<4x1xf32> to vector<2x1xf32>
    %126 = vector.extract_strided_slice %111 {offsets = [0, 0], sizes = [2, 64], strides = [1, 1]} : vector<4x64xf32> to vector<2x64xf32>
    %127 = vector.broadcast %125 : vector<2x1xf32> to vector<2x64xf32>
    %128 = arith.mulf %126, %127 : vector<2x64xf32>
    %c2_91 = arith.constant 2 : index
    %c64_92 = arith.constant 64 : index
    %129 = vector.load %arg16[%c2_91, %c64_92] : memref<4x1152xf32, #tpu.memory_space<vmem>>, vector<2x64xf32>
    tpu.vector_store %arg16[%c2_91, %c64_92], %128 {strides = array<i32>} : memref<4x1152xf32, #tpu.memory_space<vmem>>, vector<2x64xf32>,
    %cst_93 = arith.constant 0.000000e+00 : f32
    %130 = vector.broadcast %cst_93 : f32 to vector<1x64xf32>
    %c0_94 = arith.constant 0 : index
    %c128_95 = arith.constant 128 : index
    %131 = vector.load %arg16[%c0_94, %c128_95] : memref<4x1152xf32, #tpu.memory_space<vmem>>, vector<1x64xf32>
    tpu.vector_store %arg16[%c0_94, %c128_95], %130 {strides = array<i32>} : memref<4x1152xf32, #tpu.memory_space<vmem>>, vector<1x64xf32>,
    %c2_96 = arith.constant 2 : index
    %c0_97 = arith.constant 0 : index
    %c0_98 = arith.constant 0 : index
    %132 = vector.load %arg2[%c2_96, %c0_97, %c0_98] : memref<9x4x1xf32, #tpu.memory_space<vmem>>, vector<1x4x1xf32>
    %133 = vector.shape_cast %132 : vector<1x4x1xf32> to vector<4x1xf32>
    %134 = vector.extract_strided_slice %133 {offsets = [1, 0], sizes = [3, 1], strides = [1, 1]} : vector<4x1xf32> to vector<3x1xf32>
    %135 = vector.extract_strided_slice %111 {offsets = [0, 0], sizes = [3, 64], strides = [1, 1]} : vector<4x64xf32> to vector<3x64xf32>
    %136 = vector.broadcast %134 : vector<3x1xf32> to vector<3x64xf32>
    %137 = arith.mulf %135, %136 : vector<3x64xf32>
    %c1_99 = arith.constant 1 : index
    %c128_100 = arith.constant 128 : index
    %138 = vector.load %arg16[%c1_99, %c128_100] : memref<4x1152xf32, #tpu.memory_space<vmem>>, vector<3x64xf32>
    tpu.vector_store %arg16[%c1_99, %c128_100], %137 {strides = array<i32>} : memref<4x1152xf32, #tpu.memory_space<vmem>>, vector<3x64xf32>,
    %cst_101 = arith.constant 0.000000e+00 : f32
    %139 = vector.broadcast %cst_101 : f32 to vector<1x64xf32>
    %c0_102 = arith.constant 0 : index
    %c192_103 = arith.constant 192 : index
    %140 = vector.load %arg16[%c0_102, %c192_103] : memref<4x1152xf32, #tpu.memory_space<vmem>>, vector<1x64xf32>
    tpu.vector_store %arg16[%c0_102, %c192_103], %139 {strides = array<i32>} : memref<4x1152xf32, #tpu.memory_space<vmem>>, vector<1x64xf32>,
    %c3_104 = arith.constant 3 : index
    %c0_105 = arith.constant 0 : index
    %c0_106 = arith.constant 0 : index
    %141 = vector.load %arg2[%c3_104, %c0_105, %c0_106] : memref<9x4x1xf32, #tpu.memory_space<vmem>>, vector<1x4x1xf32>
    %142 = vector.shape_cast %141 : vector<1x4x1xf32> to vector<4x1xf32>
    %143 = vector.extract_strided_slice %142 {offsets = [1, 0], sizes = [3, 1], strides = [1, 1]} : vector<4x1xf32> to vector<3x1xf32>
    %144 = vector.extract_strided_slice %111 {offsets = [0, 0], sizes = [3, 64], strides = [1, 1]} : vector<4x64xf32> to vector<3x64xf32>
    %145 = vector.broadcast %143 : vector<3x1xf32> to vector<3x64xf32>
    %146 = arith.mulf %144, %145 : vector<3x64xf32>
    %c1_107 = arith.constant 1 : index
    %c192_108 = arith.constant 192 : index
    %147 = vector.load %arg16[%c1_107, %c192_108] : memref<4x1152xf32, #tpu.memory_space<vmem>>, vector<3x64xf32>
    tpu.vector_store %arg16[%c1_107, %c192_108], %146 {strides = array<i32>} : memref<4x1152xf32, #tpu.memory_space<vmem>>, vector<3x64xf32>,
    %c4_109 = arith.constant 4 : index
    %c0_110 = arith.constant 0 : index
    %c0_111 = arith.constant 0 : index
    %148 = vector.load %arg2[%c4_109, %c0_110, %c0_111] : memref<9x4x1xf32, #tpu.memory_space<vmem>>, vector<1x4x1xf32>
    %149 = vector.shape_cast %148 : vector<1x4x1xf32> to vector<4x1xf32>
    %150 = vector.broadcast %149 : vector<4x1xf32> to vector<4x64xf32>
    %151 = arith.mulf %111, %150 : vector<4x64xf32>
    %c0_112 = arith.constant 0 : index
    %c256_113 = arith.constant 256 : index
    %152 = vector.load %arg16[%c0_112, %c256_113] : memref<4x1152xf32, #tpu.memory_space<vmem>>, vector<4x64xf32>
    tpu.vector_store %arg16[%c0_112, %c256_113], %151 {strides = array<i32>} : memref<4x1152xf32, #tpu.memory_space<vmem>>, vector<4x64xf32>,
    %cst_114 = arith.constant 0.000000e+00 : f32
    %153 = vector.broadcast %cst_114 : f32 to vector<1x64xf32>
    %c3_115 = arith.constant 3 : index
    %c320_116 = arith.constant 320 : index
    %154 = vector.load %arg16[%c3_115, %c320_116] : memref<4x1152xf32, #tpu.memory_space<vmem>>, vector<1x64xf32>
    tpu.vector_store %arg16[%c3_115, %c320_116], %153 {strides = array<i32>} : memref<4x1152xf32, #tpu.memory_space<vmem>>, vector<1x64xf32>,
    %c5_117 = arith.constant 5 : index
    %c0_118 = arith.constant 0 : index
    %c0_119 = arith.constant 0 : index
    %155 = vector.load %arg2[%c5_117, %c0_118, %c0_119] : memref<9x4x1xf32, #tpu.memory_space<vmem>>, vector<1x4x1xf32>
    %156 = vector.shape_cast %155 : vector<1x4x1xf32> to vector<4x1xf32>
    %157 = vector.extract_strided_slice %156 {offsets = [0, 0], sizes = [3, 1], strides = [1, 1]} : vector<4x1xf32> to vector<3x1xf32>
    %158 = vector.extract_strided_slice %111 {offsets = [1, 0], sizes = [3, 64], strides = [1, 1]} : vector<4x64xf32> to vector<3x64xf32>
    %159 = vector.broadcast %157 : vector<3x1xf32> to vector<3x64xf32>
    %160 = arith.mulf %158, %159 : vector<3x64xf32>
    %c0_120 = arith.constant 0 : index
    %c320_121 = arith.constant 320 : index
    %161 = vector.load %arg16[%c0_120, %c320_121] : memref<4x1152xf32, #tpu.memory_space<vmem>>, vector<3x64xf32>
    tpu.vector_store %arg16[%c0_120, %c320_121], %160 {strides = array<i32>} : memref<4x1152xf32, #tpu.memory_space<vmem>>, vector<3x64xf32>,
    %cst_122 = arith.constant 0.000000e+00 : f32
    %162 = vector.broadcast %cst_122 : f32 to vector<1x64xf32>
    %c3_123 = arith.constant 3 : index
    %c384_124 = arith.constant 384 : index
    %163 = vector.load %arg16[%c3_123, %c384_124] : memref<4x1152xf32, #tpu.memory_space<vmem>>, vector<1x64xf32>
    tpu.vector_store %arg16[%c3_123, %c384_124], %162 {strides = array<i32>} : memref<4x1152xf32, #tpu.memory_space<vmem>>, vector<1x64xf32>,
    %c6_125 = arith.constant 6 : index
    %c0_126 = arith.constant 0 : index
    %c0_127 = arith.constant 0 : index
    %164 = vector.load %arg2[%c6_125, %c0_126, %c0_127] : memref<9x4x1xf32, #tpu.memory_space<vmem>>, vector<1x4x1xf32>
    %165 = vector.shape_cast %164 : vector<1x4x1xf32> to vector<4x1xf32>
    %166 = vector.extract_strided_slice %165 {offsets = [0, 0], sizes = [3, 1], strides = [1, 1]} : vector<4x1xf32> to vector<3x1xf32>
    %167 = vector.extract_strided_slice %111 {offsets = [1, 0], sizes = [3, 64], strides = [1, 1]} : vector<4x64xf32> to vector<3x64xf32>
    %168 = vector.broadcast %166 : vector<3x1xf32> to vector<3x64xf32>
    %169 = arith.mulf %167, %168 : vector<3x64xf32>
    %c0_128 = arith.constant 0 : index
    %c384_129 = arith.constant 384 : index
    %170 = vector.load %arg16[%c0_128, %c384_129] : memref<4x1152xf32, #tpu.memory_space<vmem>>, vector<3x64xf32>
    tpu.vector_store %arg16[%c0_128, %c384_129], %169 {strides = array<i32>} : memref<4x1152xf32, #tpu.memory_space<vmem>>, vector<3x64xf32>,
    %cst_130 = arith.constant 0.000000e+00 : f32
    %171 = vector.broadcast %cst_130 : f32 to vector<2x64xf32>
    %c2_131 = arith.constant 2 : index
    %c448_132 = arith.constant 448 : index
    %172 = vector.load %arg16[%c2_131, %c448_132] : memref<4x1152xf32, #tpu.memory_space<vmem>>, vector<2x64xf32>
    tpu.vector_store %arg16[%c2_131, %c448_132], %171 {strides = array<i32>} : memref<4x1152xf32, #tpu.memory_space<vmem>>, vector<2x64xf32>,
    %c7_133 = arith.constant 7 : index
    %c0_134 = arith.constant 0 : index
    %c0_135 = arith.constant 0 : index
    %173 = vector.load %arg2[%c7_133, %c0_134, %c0_135] : memref<9x4x1xf32, #tpu.memory_space<vmem>>, vector<1x4x1xf32>
    %174 = vector.shape_cast %173 : vector<1x4x1xf32> to vector<4x1xf32>
    %175 = vector.extract_strided_slice %174 {offsets = [0, 0], sizes = [2, 1], strides = [1, 1]} : vector<4x1xf32> to vector<2x1xf32>
    %176 = vector.extract_strided_slice %111 {offsets = [2, 0], sizes = [2, 64], strides = [1, 1]} : vector<4x64xf32> to vector<2x64xf32>
    %177 = vector.broadcast %175 : vector<2x1xf32> to vector<2x64xf32>
    %178 = arith.mulf %176, %177 : vector<2x64xf32>
    %c0_136 = arith.constant 0 : index
    %c448_137 = arith.constant 448 : index
    %179 = vector.load %arg16[%c0_136, %c448_137] : memref<4x1152xf32, #tpu.memory_space<vmem>>, vector<2x64xf32>
    tpu.vector_store %arg16[%c0_136, %c448_137], %178 {strides = array<i32>} : memref<4x1152xf32, #tpu.memory_space<vmem>>, vector<2x64xf32>,
    %cst_138 = arith.constant 0.000000e+00 : f32
    %180 = vector.broadcast %cst_138 : f32 to vector<3x64xf32>
    %c1_139 = arith.constant 1 : index
    %c512_140 = arith.constant 512 : index
    %181 = vector.load %arg16[%c1_139, %c512_140] : memref<4x1152xf32, #tpu.memory_space<vmem>>, vector<3x64xf32>
    tpu.vector_store %arg16[%c1_139, %c512_140], %180 {strides = array<i32>} : memref<4x1152xf32, #tpu.memory_space<vmem>>, vector<3x64xf32>,
    %c8_141 = arith.constant 8 : index
    %c0_142 = arith.constant 0 : index
    %c0_143 = arith.constant 0 : index
    %182 = vector.load %arg2[%c8_141, %c0_142, %c0_143] : memref<9x4x1xf32, #tpu.memory_space<vmem>>, vector<1x4x1xf32>
    %183 = vector.shape_cast %182 : vector<1x4x1xf32> to vector<4x1xf32>
    %184 = vector.extract_strided_slice %183 {offsets = [0, 0], sizes = [1, 1], strides = [1, 1]} : vector<4x1xf32> to vector<1x1xf32>
    %185 = vector.extract_strided_slice %111 {offsets = [3, 0], sizes = [1, 64], strides = [1, 1]} : vector<4x64xf32> to vector<1x64xf32>
    %186 = vector.broadcast %184 : vector<1x1xf32> to vector<1x64xf32>
    %187 = arith.mulf %185, %186 : vector<1x64xf32>
    %c0_144 = arith.constant 0 : index
    %c512_145 = arith.constant 512 : index
    %188 = vector.load %arg16[%c0_144, %c512_145] : memref<4x1152xf32, #tpu.memory_space<vmem>>, vector<1x64xf32>
    tpu.vector_store %arg16[%c0_144, %c512_145], %187 {strides = array<i32>} : memref<4x1152xf32, #tpu.memory_space<vmem>>, vector<1x64xf32>,
    %c0_146 = arith.constant 0 : index
    %c0_147 = arith.constant 0 : index
    %189 = vector.load %arg16[%c0_146, %c0_147] : memref<4x1152xf32, #tpu.memory_space<vmem>>, vector<4x576xf32>
    %190 = arith.truncf %189 : vector<4x576xf32> to vector<4x576xbf16>
    %c0_148 = arith.constant 0 : index
    %c0_149 = arith.constant 0 : index
    %191 = vector.load %arg9[%c0_148, %c0_149] : memref<576x128xbf16, #tpu.memory_space<vmem>>, vector<576x128xbf16>
    %cst_150 = arith.constant dense<0.000000e+00> : vector<4x128xf32>
    %192 = tpu.matmul %190, %191, %cst_150 {dimension_numbers = #tpu.dot_dimension_numbers<[1], [0], [0], [1], [0, 0, 1, 1], [], []>} : vector<4x576xbf16>, vector<576x128xbf16>, vector<4x128xf32> -> vector<4x128xf32>
    %c0_151 = arith.constant 0 : index
    %c0_152 = arith.constant 0 : index
    %193 = vector.load %arg10[%c0_151, %c0_152] : memref<1x128xf32, #tpu.memory_space<vmem>>, vector<1x128xf32>
    %194 = vector.broadcast %193 : vector<1x128xf32> to vector<4x128xf32>
    %195 = arith.addf %192, %194 : vector<4x128xf32>
    %cst_153 = arith.constant 0.000000e+00 : f32
    %196 = vector.broadcast %cst_153 : f32 to vector<4x128xf32>
    %197 = arith.cmpf ogt, %195, %196 : vector<4x128xf32>
    %cst_154 = arith.constant 1.000000e-01 : f32
    %198 = vector.broadcast %cst_154 : f32 to vector<4x128xf32>
    %199 = arith.mulf %198, %195 : vector<4x128xf32>
    %200 = arith.select %197, %195, %199 : vector<4x128xi1>, vector<4x128xf32>
    %cst_155 = arith.constant 0.000000e+00 : f32
    %201 = vector.broadcast %cst_155 : f32 to vector<3x128xf32>
    %c0_156 = arith.constant 0 : index
    %c0_157 = arith.constant 0 : index
    %202 = vector.load %arg16[%c0_156, %c0_157] : memref<4x1152xf32, #tpu.memory_space<vmem>>, vector<3x128xf32>
    tpu.vector_store %arg16[%c0_156, %c0_157], %201 {strides = array<i32>} : memref<4x1152xf32, #tpu.memory_space<vmem>>, vector<3x128xf32>,
    %c0_158 = arith.constant 0 : index
    %c0_159 = arith.constant 0 : index
    %c0_160 = arith.constant 0 : index
    %203 = vector.load %arg2[%c0_158, %c0_159, %c0_160] : memref<9x4x1xf32, #tpu.memory_space<vmem>>, vector<1x4x1xf32>
    %204 = vector.shape_cast %203 : vector<1x4x1xf32> to vector<4x1xf32>
    %205 = vector.extract_strided_slice %204 {offsets = [3, 0], sizes = [1, 1], strides = [1, 1]} : vector<4x1xf32> to vector<1x1xf32>
    %206 = vector.extract_strided_slice %200 {offsets = [0, 0], sizes = [1, 128], strides = [1, 1]} : vector<4x128xf32> to vector<1x128xf32>
    %207 = vector.broadcast %205 : vector<1x1xf32> to vector<1x128xf32>
    %208 = arith.mulf %206, %207 : vector<1x128xf32>
    %c3_161 = arith.constant 3 : index
    %c0_162 = arith.constant 0 : index
    %209 = vector.load %arg16[%c3_161, %c0_162] : memref<4x1152xf32, #tpu.memory_space<vmem>>, vector<1x128xf32>
    tpu.vector_store %arg16[%c3_161, %c0_162], %208 {strides = array<i32>} : memref<4x1152xf32, #tpu.memory_space<vmem>>, vector<1x128xf32>,
    %cst_163 = arith.constant 0.000000e+00 : f32
    %210 = vector.broadcast %cst_163 : f32 to vector<2x128xf32>
    %c0_164 = arith.constant 0 : index
    %c128_165 = arith.constant 128 : index
    %211 = vector.load %arg16[%c0_164, %c128_165] : memref<4x1152xf32, #tpu.memory_space<vmem>>, vector<2x128xf32>
    tpu.vector_store %arg16[%c0_164, %c128_165], %210 {strides = array<i32>} : memref<4x1152xf32, #tpu.memory_space<vmem>>, vector<2x128xf32>,
    %c1_166 = arith.constant 1 : index
    %c0_167 = arith.constant 0 : index
    %c0_168 = arith.constant 0 : index
    %212 = vector.load %arg2[%c1_166, %c0_167, %c0_168] : memref<9x4x1xf32, #tpu.memory_space<vmem>>, vector<1x4x1xf32>
    %213 = vector.shape_cast %212 : vector<1x4x1xf32> to vector<4x1xf32>
    %214 = vector.extract_strided_slice %213 {offsets = [2, 0], sizes = [2, 1], strides = [1, 1]} : vector<4x1xf32> to vector<2x1xf32>
    %215 = vector.extract_strided_slice %200 {offsets = [0, 0], sizes = [2, 128], strides = [1, 1]} : vector<4x128xf32> to vector<2x128xf32>
    %216 = vector.broadcast %214 : vector<2x1xf32> to vector<2x128xf32>
    %217 = arith.mulf %215, %216 : vector<2x128xf32>
    %c2_169 = arith.constant 2 : index
    %c128_170 = arith.constant 128 : index
    %218 = vector.load %arg16[%c2_169, %c128_170] : memref<4x1152xf32, #tpu.memory_space<vmem>>, vector<2x128xf32>
    tpu.vector_store %arg16[%c2_169, %c128_170], %217 {strides = array<i32>} : memref<4x1152xf32, #tpu.memory_space<vmem>>, vector<2x128xf32>,
    %cst_171 = arith.constant 0.000000e+00 : f32
    %219 = vector.broadcast %cst_171 : f32 to vector<1x128xf32>
    %c0_172 = arith.constant 0 : index
    %c256_173 = arith.constant 256 : index
    %220 = vector.load %arg16[%c0_172, %c256_173] : memref<4x1152xf32, #tpu.memory_space<vmem>>, vector<1x128xf32>
    tpu.vector_store %arg16[%c0_172, %c256_173], %219 {strides = array<i32>} : memref<4x1152xf32, #tpu.memory_space<vmem>>, vector<1x128xf32>,
    %c2_174 = arith.constant 2 : index
    %c0_175 = arith.constant 0 : index
    %c0_176 = arith.constant 0 : index
    %221 = vector.load %arg2[%c2_174, %c0_175, %c0_176] : memref<9x4x1xf32, #tpu.memory_space<vmem>>, vector<1x4x1xf32>
    %222 = vector.shape_cast %221 : vector<1x4x1xf32> to vector<4x1xf32>
    %223 = vector.extract_strided_slice %222 {offsets = [1, 0], sizes = [3, 1], strides = [1, 1]} : vector<4x1xf32> to vector<3x1xf32>
    %224 = vector.extract_strided_slice %200 {offsets = [0, 0], sizes = [3, 128], strides = [1, 1]} : vector<4x128xf32> to vector<3x128xf32>
    %225 = vector.broadcast %223 : vector<3x1xf32> to vector<3x128xf32>
    %226 = arith.mulf %224, %225 : vector<3x128xf32>
    %c1_177 = arith.constant 1 : index
    %c256_178 = arith.constant 256 : index
    %227 = vector.load %arg16[%c1_177, %c256_178] : memref<4x1152xf32, #tpu.memory_space<vmem>>, vector<3x128xf32>
    tpu.vector_store %arg16[%c1_177, %c256_178], %226 {strides = array<i32>} : memref<4x1152xf32, #tpu.memory_space<vmem>>, vector<3x128xf32>,
    %cst_179 = arith.constant 0.000000e+00 : f32
    %228 = vector.broadcast %cst_179 : f32 to vector<1x128xf32>
    %c0_180 = arith.constant 0 : index
    %c384_181 = arith.constant 384 : index
    %229 = vector.load %arg16[%c0_180, %c384_181] : memref<4x1152xf32, #tpu.memory_space<vmem>>, vector<1x128xf32>
    tpu.vector_store %arg16[%c0_180, %c384_181], %228 {strides = array<i32>} : memref<4x1152xf32, #tpu.memory_space<vmem>>, vector<1x128xf32>,
    %c3_182 = arith.constant 3 : index
    %c0_183 = arith.constant 0 : index
    %c0_184 = arith.constant 0 : index
    %230 = vector.load %arg2[%c3_182, %c0_183, %c0_184] : memref<9x4x1xf32, #tpu.memory_space<vmem>>, vector<1x4x1xf32>
    %231 = vector.shape_cast %230 : vector<1x4x1xf32> to vector<4x1xf32>
    %232 = vector.extract_strided_slice %231 {offsets = [1, 0], sizes = [3, 1], strides = [1, 1]} : vector<4x1xf32> to vector<3x1xf32>
    %233 = vector.extract_strided_slice %200 {offsets = [0, 0], sizes = [3, 128], strides = [1, 1]} : vector<4x128xf32> to vector<3x128xf32>
    %234 = vector.broadcast %232 : vector<3x1xf32> to vector<3x128xf32>
    %235 = arith.mulf %233, %234 : vector<3x128xf32>
    %c1_185 = arith.constant 1 : index
    %c384_186 = arith.constant 384 : index
    %236 = vector.load %arg16[%c1_185, %c384_186] : memref<4x1152xf32, #tpu.memory_space<vmem>>, vector<3x128xf32>
    tpu.vector_store %arg16[%c1_185, %c384_186], %235 {strides = array<i32>} : memref<4x1152xf32, #tpu.memory_space<vmem>>, vector<3x128xf32>,
    %c4_187 = arith.constant 4 : index
    %c0_188 = arith.constant 0 : index
    %c0_189 = arith.constant 0 : index
    %237 = vector.load %arg2[%c4_187, %c0_188, %c0_189] : memref<9x4x1xf32, #tpu.memory_space<vmem>>, vector<1x4x1xf32>
    %238 = vector.shape_cast %237 : vector<1x4x1xf32> to vector<4x1xf32>
    %239 = vector.broadcast %238 : vector<4x1xf32> to vector<4x128xf32>
    %240 = arith.mulf %200, %239 : vector<4x128xf32>
    %c0_190 = arith.constant 0 : index
    %c512_191 = arith.constant 512 : index
    %241 = vector.load %arg16[%c0_190, %c512_191] : memref<4x1152xf32, #tpu.memory_space<vmem>>, vector<4x128xf32>
    tpu.vector_store %arg16[%c0_190, %c512_191], %240 {strides = array<i32>} : memref<4x1152xf32, #tpu.memory_space<vmem>>, vector<4x128xf32>,
    %cst_192 = arith.constant 0.000000e+00 : f32
    %242 = vector.broadcast %cst_192 : f32 to vector<1x128xf32>
    %c3_193 = arith.constant 3 : index
    %c640 = arith.constant 640 : index
    %243 = vector.load %arg16[%c3_193, %c640] : memref<4x1152xf32, #tpu.memory_space<vmem>>, vector<1x128xf32>
    tpu.vector_store %arg16[%c3_193, %c640], %242 {strides = array<i32>} : memref<4x1152xf32, #tpu.memory_space<vmem>>, vector<1x128xf32>,
    %c5_194 = arith.constant 5 : index
    %c0_195 = arith.constant 0 : index
    %c0_196 = arith.constant 0 : index
    %244 = vector.load %arg2[%c5_194, %c0_195, %c0_196] : memref<9x4x1xf32, #tpu.memory_space<vmem>>, vector<1x4x1xf32>
    %245 = vector.shape_cast %244 : vector<1x4x1xf32> to vector<4x1xf32>
    %246 = vector.extract_strided_slice %245 {offsets = [0, 0], sizes = [3, 1], strides = [1, 1]} : vector<4x1xf32> to vector<3x1xf32>
    %247 = vector.extract_strided_slice %200 {offsets = [1, 0], sizes = [3, 128], strides = [1, 1]} : vector<4x128xf32> to vector<3x128xf32>
    %248 = vector.broadcast %246 : vector<3x1xf32> to vector<3x128xf32>
    %249 = arith.mulf %247, %248 : vector<3x128xf32>
    %c0_197 = arith.constant 0 : index
    %c640_198 = arith.constant 640 : index
    %250 = vector.load %arg16[%c0_197, %c640_198] : memref<4x1152xf32, #tpu.memory_space<vmem>>, vector<3x128xf32>
    tpu.vector_store %arg16[%c0_197, %c640_198], %249 {strides = array<i32>} : memref<4x1152xf32, #tpu.memory_space<vmem>>, vector<3x128xf32>,
    %cst_199 = arith.constant 0.000000e+00 : f32
    %251 = vector.broadcast %cst_199 : f32 to vector<1x128xf32>
    %c3_200 = arith.constant 3 : index
    %c768 = arith.constant 768 : index
    %252 = vector.load %arg16[%c3_200, %c768] : memref<4x1152xf32, #tpu.memory_space<vmem>>, vector<1x128xf32>
    tpu.vector_store %arg16[%c3_200, %c768], %251 {strides = array<i32>} : memref<4x1152xf32, #tpu.memory_space<vmem>>, vector<1x128xf32>,
    %c6_201 = arith.constant 6 : index
    %c0_202 = arith.constant 0 : index
    %c0_203 = arith.constant 0 : index
    %253 = vector.load %arg2[%c6_201, %c0_202, %c0_203] : memref<9x4x1xf32, #tpu.memory_space<vmem>>, vector<1x4x1xf32>
    %254 = vector.shape_cast %253 : vector<1x4x1xf32> to vector<4x1xf32>
    %255 = vector.extract_strided_slice %254 {offsets = [0, 0], sizes = [3, 1], strides = [1, 1]} : vector<4x1xf32> to vector<3x1xf32>
    %256 = vector.extract_strided_slice %200 {offsets = [1, 0], sizes = [3, 128], strides = [1, 1]} : vector<4x128xf32> to vector<3x128xf32>
    %257 = vector.broadcast %255 : vector<3x1xf32> to vector<3x128xf32>
    %258 = arith.mulf %256, %257 : vector<3x128xf32>
    %c0_204 = arith.constant 0 : index
    %c768_205 = arith.constant 768 : index
    %259 = vector.load %arg16[%c0_204, %c768_205] : memref<4x1152xf32, #tpu.memory_space<vmem>>, vector<3x128xf32>
    tpu.vector_store %arg16[%c0_204, %c768_205], %258 {strides = array<i32>} : memref<4x1152xf32, #tpu.memory_space<vmem>>, vector<3x128xf32>,
    %cst_206 = arith.constant 0.000000e+00 : f32
    %260 = vector.broadcast %cst_206 : f32 to vector<2x128xf32>
    %c2_207 = arith.constant 2 : index
    %c896 = arith.constant 896 : index
    %261 = vector.load %arg16[%c2_207, %c896] : memref<4x1152xf32, #tpu.memory_space<vmem>>, vector<2x128xf32>
    tpu.vector_store %arg16[%c2_207, %c896], %260 {strides = array<i32>} : memref<4x1152xf32, #tpu.memory_space<vmem>>, vector<2x128xf32>,
    %c7_208 = arith.constant 7 : index
    %c0_209 = arith.constant 0 : index
    %c0_210 = arith.constant 0 : index
    %262 = vector.load %arg2[%c7_208, %c0_209, %c0_210] : memref<9x4x1xf32, #tpu.memory_space<vmem>>, vector<1x4x1xf32>
    %263 = vector.shape_cast %262 : vector<1x4x1xf32> to vector<4x1xf32>
    %264 = vector.extract_strided_slice %263 {offsets = [0, 0], sizes = [2, 1], strides = [1, 1]} : vector<4x1xf32> to vector<2x1xf32>
    %265 = vector.extract_strided_slice %200 {offsets = [2, 0], sizes = [2, 128], strides = [1, 1]} : vector<4x128xf32> to vector<2x128xf32>
    %266 = vector.broadcast %264 : vector<2x1xf32> to vector<2x128xf32>
    %267 = arith.mulf %265, %266 : vector<2x128xf32>
    %c0_211 = arith.constant 0 : index
    %c896_212 = arith.constant 896 : index
    %268 = vector.load %arg16[%c0_211, %c896_212] : memref<4x1152xf32, #tpu.memory_space<vmem>>, vector<2x128xf32>
    tpu.vector_store %arg16[%c0_211, %c896_212], %267 {strides = array<i32>} : memref<4x1152xf32, #tpu.memory_space<vmem>>, vector<2x128xf32>,
    %cst_213 = arith.constant 0.000000e+00 : f32
    %269 = vector.broadcast %cst_213 : f32 to vector<3x128xf32>
    %c1_214 = arith.constant 1 : index
    %c1024 = arith.constant 1024 : index
    %270 = vector.load %arg16[%c1_214, %c1024] : memref<4x1152xf32, #tpu.memory_space<vmem>>, vector<3x128xf32>
    tpu.vector_store %arg16[%c1_214, %c1024], %269 {strides = array<i32>} : memref<4x1152xf32, #tpu.memory_space<vmem>>, vector<3x128xf32>,
    %c8_215 = arith.constant 8 : index
    %c0_216 = arith.constant 0 : index
    %c0_217 = arith.constant 0 : index
    %271 = vector.load %arg2[%c8_215, %c0_216, %c0_217] : memref<9x4x1xf32, #tpu.memory_space<vmem>>, vector<1x4x1xf32>
    %272 = vector.shape_cast %271 : vector<1x4x1xf32> to vector<4x1xf32>
    %273 = vector.extract_strided_slice %272 {offsets = [0, 0], sizes = [1, 1], strides = [1, 1]} : vector<4x1xf32> to vector<1x1xf32>
    %274 = vector.extract_strided_slice %200 {offsets = [3, 0], sizes = [1, 128], strides = [1, 1]} : vector<4x128xf32> to vector<1x128xf32>
    %275 = vector.broadcast %273 : vector<1x1xf32> to vector<1x128xf32>
    %276 = arith.mulf %274, %275 : vector<1x128xf32>
    %c0_218 = arith.constant 0 : index
    %c1024_219 = arith.constant 1024 : index
    %277 = vector.load %arg16[%c0_218, %c1024_219] : memref<4x1152xf32, #tpu.memory_space<vmem>>, vector<1x128xf32>
    tpu.vector_store %arg16[%c0_218, %c1024_219], %276 {strides = array<i32>} : memref<4x1152xf32, #tpu.memory_space<vmem>>, vector<1x128xf32>,
    %c0_220 = arith.constant 0 : index
    %c0_221 = arith.constant 0 : index
    %278 = vector.load %arg16[%c0_220, %c0_221] : memref<4x1152xf32, #tpu.memory_space<vmem>>, vector<4x1152xf32>
    %279 = arith.truncf %278 : vector<4x1152xf32> to vector<4x1152xbf16>
    %c0_222 = arith.constant 0 : index
    %c0_223 = arith.constant 0 : index
    %280 = vector.load %arg11[%c0_222, %c0_223] : memref<1152x128xbf16, #tpu.memory_space<vmem>>, vector<1152x128xbf16>
    %cst_224 = arith.constant dense<0.000000e+00> : vector<4x128xf32>
    %281 = tpu.matmul %279, %280, %cst_224 {dimension_numbers = #tpu.dot_dimension_numbers<[1], [0], [0], [1], [0, 0, 1, 1], [], []>} : vector<4x1152xbf16>, vector<1152x128xbf16>, vector<4x128xf32> -> vector<4x128xf32>
    %c0_225 = arith.constant 0 : index
    %c0_226 = arith.constant 0 : index
    %282 = vector.load %arg12[%c0_225, %c0_226] : memref<1x128xf32, #tpu.memory_space<vmem>>, vector<1x128xf32>
    %283 = vector.broadcast %282 : vector<1x128xf32> to vector<4x128xf32>
    %284 = arith.addf %281, %283 : vector<4x128xf32>
    %cst_227 = arith.constant 0.000000e+00 : f32
    %285 = vector.broadcast %cst_227 : f32 to vector<4x128xf32>
    %286 = arith.cmpf ogt, %284, %285 : vector<4x128xf32>
    %cst_228 = arith.constant 1.000000e-01 : f32
    %287 = vector.broadcast %cst_228 : f32 to vector<4x128xf32>
    %288 = arith.mulf %287, %284 : vector<4x128xf32>
    %289 = arith.select %286, %284, %288 : vector<4x128xi1>, vector<4x128xf32>
    %290 = arith.truncf %289 : vector<4x128xf32> to vector<4x128xbf16>
    %c0_229 = arith.constant 0 : index
    %c0_230 = arith.constant 0 : index
    %291 = vector.load %arg13[%c0_229, %c0_230] : memref<128x128xbf16, #tpu.memory_space<vmem>>, vector<128x128xbf16>
    %cst_231 = arith.constant dense<0.000000e+00> : vector<4x128xf32>
    %292 = tpu.matmul %290, %291, %cst_231 {dimension_numbers = #tpu.dot_dimension_numbers<[1], [0], [0], [1], [0, 0, 1, 1], [], []>} : vector<4x128xbf16>, vector<128x128xbf16>, vector<4x128xf32> -> vector<4x128xf32>
    %c0_232 = arith.constant 0 : index
    %c0_233 = arith.constant 0 : index
    %293 = vector.load %arg14[%c0_232, %c0_233] : memref<1x128xf32, #tpu.memory_space<vmem>>, vector<1x128xf32>
    %294 = vector.broadcast %293 : vector<1x128xf32> to vector<4x128xf32>
    %295 = arith.addf %292, %294 : vector<4x128xf32>
    %c0_234 = arith.constant 0 : index
    %c0_235 = arith.constant 0 : index
    %c0_236 = arith.constant 0 : index
    %296 = vector.load %arg15[%c0_234, %c0_235, %c0_236] : memref<1x4x128xf32, #tpu.memory_space<vmem>>, vector<1x4x128xf32>
    %297 = vector.shape_cast %296 : vector<1x4x128xf32> to vector<4x128xf32>
    %298 = vector.shape_cast %295 : vector<4x128xf32> to vector<1x4x128xf32>
    tpu.vector_store %arg15[%c0_234, %c0_235, %c0_236], %298 {strides = array<i32>} : memref<1x4x128xf32, #tpu.memory_space<vmem>>, vector<1x4x128xf32>,
    return
  }
  func.func @transform_0(%arg0: i32) -> (i32, i32, i32) {
    %c0_i32 = arith.constant 0 : i32
    %c0_i32_0 = arith.constant 0 : i32
    %c0_i32_1 = arith.constant 0 : i32
    return %arg0, %c0_i32, %c0_i32_0 : i32, i32, i32
  }
  func.func @transform_1(%arg0: i32) -> (i32, i32, i32) {
    %c0_i32 = arith.constant 0 : i32
    %c0_i32_0 = arith.constant 0 : i32
    %c0_i32_1 = arith.constant 0 : i32
    %c0_i32_2 = arith.constant 0 : i32
    return %c0_i32, %c0_i32_0, %c0_i32_1 : i32, i32, i32
  }
  func.func @transform_2(%arg0: i32) -> (i32, i32) {
    %c0_i32 = arith.constant 0 : i32
    %c0_i32_0 = arith.constant 0 : i32
    %c0_i32_1 = arith.constant 0 : i32
    return %c0_i32, %c0_i32_0 : i32, i32
  }
  func.func @transform_3(%arg0: i32) -> (i32, i32) {
    %c0_i32 = arith.constant 0 : i32
    %c0_i32_0 = arith.constant 0 : i32
    %c0_i32_1 = arith.constant 0 : i32
    return %c0_i32, %c0_i32_0 : i32, i32
  }
  func.func @transform_4(%arg0: i32) -> (i32, i32) {
    %c0_i32 = arith.constant 0 : i32
    %c0_i32_0 = arith.constant 0 : i32
    %c0_i32_1 = arith.constant 0 : i32
    return %c0_i32, %c0_i32_0 : i32, i32
  }
  func.func @transform_5(%arg0: i32) -> (i32, i32) {
    %c0_i32 = arith.constant 0 : i32
    %c0_i32_0 = arith.constant 0 : i32
    %c0_i32_1 = arith.constant 0 : i32
    return %c0_i32, %c0_i32_0 : i32, i32
  }
  func.func @transform_6(%arg0: i32) -> (i32, i32) {
    %c0_i32 = arith.constant 0 : i32
    %c0_i32_0 = arith.constant 0 : i32
    %c0_i32_1 = arith.constant 0 : i32
    return %c0_i32, %c0_i32_0 : i32, i32
  }
  func.func @transform_7(%arg0: i32) -> (i32, i32) {
    %c0_i32 = arith.constant 0 : i32
    %c0_i32_0 = arith.constant 0 : i32
    %c0_i32_1 = arith.constant 0 : i32
    return %c0_i32, %c0_i32_0 : i32, i32
  }
  func.func @transform_8(%arg0: i32) -> (i32, i32) {
    %c0_i32 = arith.constant 0 : i32
    %c0_i32_0 = arith.constant 0 : i32
    %c0_i32_1 = arith.constant 0 : i32
    return %c0_i32, %c0_i32_0 : i32, i32
  }
  func.func @transform_9(%arg0: i32) -> (i32, i32) {
    %c0_i32 = arith.constant 0 : i32
    %c0_i32_0 = arith.constant 0 : i32
    %c0_i32_1 = arith.constant 0 : i32
    return %c0_i32, %c0_i32_0 : i32, i32
  }
  func.func @transform_10(%arg0: i32) -> (i32, i32) {
    %c0_i32 = arith.constant 0 : i32
    %c0_i32_0 = arith.constant 0 : i32
    %c0_i32_1 = arith.constant 0 : i32
    return %c0_i32, %c0_i32_0 : i32, i32
  }
  func.func @transform_11(%arg0: i32) -> (i32, i32) {
    %c0_i32 = arith.constant 0 : i32
    %c0_i32_0 = arith.constant 0 : i32
    %c0_i32_1 = arith.constant 0 : i32
    return %c0_i32, %c0_i32_0 : i32, i32
  }
  func.func @transform_12(%arg0: i32) -> (i32, i32) {
    %c0_i32 = arith.constant 0 : i32
    %c0_i32_0 = arith.constant 0 : i32
    %c0_i32_1 = arith.constant 0 : i32
    return %c0_i32, %c0_i32_0 : i32, i32
  }
  func.func @transform_13(%arg0: i32) -> (i32, i32) {
    %c0_i32 = arith.constant 0 : i32
    %c0_i32_0 = arith.constant 0 : i32
    %c0_i32_1 = arith.constant 0 : i32
    return %c0_i32, %c0_i32_0 : i32, i32
  }
  func.func @transform_14(%arg0: i32) -> (i32, i32, i32) {
    %c0_i32 = arith.constant 0 : i32
    %c0_i32_0 = arith.constant 0 : i32
    %c0_i32_1 = arith.constant 0 : i32
    return %arg0, %c0_i32, %c0_i32_0 : i32, i32, i32
  }
}

</mosaic_0001>

<bundles_post_ra>
// kernel: yolo_forward.2
= control target key start
LH: loop header
LB: loop body
LE: loop exit
PB: predicated region body
PF: predicated region fallthrough
CT: control target
= control target key end

     0   :  { %s1384_s12 = smov 0   ;;  %s1386_s13 = smov 0   ;;  %s1526_s0 = inlined_call_operand.vmem [shape: bf16[2,4,3072], index: 0, kind: input, shape index: {}]   ;;  %s1527_s1 = inlined_call_operand.vmem [shape: bf16[3072,128], index: 1, kind: input, shape index: {}]   ;;  %s1528_s2 = inlined_call_operand.vmem [shape: f32[1,128], index: 2, kind: input, shape index: {}]   ;;  %s1529_s3 = inlined_call_operand.vmem [shape: bf16[2,4,128], index: 3, kind: output, shape index: {}]  }
   0x1   :  { %s1388_s14 = smov 0   ;;  %s1390_s15 = smov 0  }
   0x2   :  { %s1392_s16 = smov 0  }
   0x3 LB: > { %s22_s17 = sadd.s32 1, %s1352_s14  ;;  %s25_s18 = sadd.s32 1, %s1356_s15  ;;  %s1360_s16 = sphi %s1392_s16, %s13_s16   ;;  %s1356_s15 = sphi %s1390_s15, %s1533_s15   ;;  %s1352_s14 = sphi %s1388_s14, %s1532_s14   ;;  %s1348_s13 = sphi %s1386_s13, %s1531_s13   ;;  %s1344_s12 = sphi %s1384_s12, %s1530_s12  }
   0x4   : > { %p23_p0 = scmp.ge.s32.totalorder %s22_s17, 3  ;;  %p1050_p1 = scmp.ge.s32.totalorder %s1360_s16, 1 }
   0x5   : > { %p167_p2 = scmp.lt.s32.totalorder %s1360_s16, 7 }
   0x6   : > { %s1535_s17 = smov (%p23_p0, %s22_s17), 0  ;;  %s1537_s18 = smov (!%p23_p0, %s25_s18), %s1356_s15 }
   0x7   : > { %p168_p3 = pnand %p1050_p1, %p167_p2  ;;  %p27_p4 = scmp.ge.s32.totalorder %s1537_s18, 2 }
   0x8   : > { %s1051_s19 = sshll.u32 (!%p168_p3), %s1344_s12, 3  ;;  %p200_p5 = scmp.lt.s32.totalorder (!%p168_p3), %s1348_s13, 1 }
   0x9   : > { %s1539_s18 = smov (%p27_p4, %s1537_s18), 0  ;;  %171 = sbr.rel (%p168_p3) target bundleno = 331 (0x14b), region = 32 }
   0xa   : > { %p202_p6 = scmp.lt.s32.totalorder (!%p168_p3), %s1051_s19, 23  ;;  %s1053_s20 = sshll.u32 (!%p168_p3), %s1344_s12, 7 }
   0xb   : > { %p210_p7 = scmp.lt.s32.totalorder (!%p168_p3), %s1053_s20, 383  ;;  %p1056_p8 = scmp.ne.s32.totalorder (!%p168_p3), %s1344_s12, 0 }
  0x10   : > { %s1541_s13 = smov (!%p200_p5, %s1348_s13), 1  ;;  %s1543_s19 = smov (!%p202_p6, %s1051_s19), 23 }
  0x11   : > { %s1213_s21 = smul.u32 24, %s1541_s13  ;;  %s1055_s22 = sshll.u32 %s1541_s13, 1  ;;  %v1362_v0 = vmov (!%p1056_p8), 0.0  }
  0x12   : > { %s1421_s26 = scalar_lea.vmem %s1529_s3, %s1055_s22  ;;  %s1545_s20 = smov (!%p210_p7, %s1053_s20), 383  ;;  %224 = vst [vmem:[#allocation2] sm:$0xf] (!%p1056_p8), %v1362_v0 }
  0x13   : > { %s205_s23 = sadd.s32 %s1213_s21, %s1543_s19  ;;  %s1054_s4 = sshll.u32 %s1545_s20, 2 }
  0x14   : > { %s1052_s27 = sshll.u32 %s205_s23, 1  ;;  %s1431_s7 = scalar_lea.vmem %s1527_s1, %s1054_s4 }
  0x15   : > { %s1426_s30 = scalar_lea.vmem %s1526_s0, %s1052_s27  ;;  %223 = sbr.rel (%p1056_p8) target bundleno = 28 (0x1c), region = 36 }
  0x1c PF: > { %v1256_v1 = vld [vmem:[%s1431_s7 + $0x40] sm:$0xff]   ;;  %v1260_v5 = vld [vmem:[%s1431_s7 + $0x48] sm:$0xff]   ;;  %v1264_v9 = vld [vmem:[%s1431_s7 + $0x50] sm:$0xff]   ;;  %v362_v29 = vlaneseq  ;;  %v1363_v37 = vmov 1983009808   ;;  %p1121_p9 = scmp.ne.s32.totalorder %s1344_s12, 2 }
  0x1d   : > { %v1257_v2 = vld [vmem:[%s1431_s7 + $0xc0] sm:$0xff]   ;;  %1125 = vmatprep.subr.bf16.mxu0 %v1256_v1  ;;  %v1261_v6 = vld [vmem:[%s1431_s7 + $0xc8] sm:$0xff]   ;;  %v1265_v10 = vld [vmem:[%s1431_s7 + $0xd0] sm:$0xff]   ;;  %v360_v38 = vunpack.c.l.s4 %v1363_v37 }
  0x1e   : > { %v1258_v3 = vld [vmem:[%s1431_s7] sm:$0xff]   ;;  %1147 = vmatprep.subr.bf16.mxu1 %v1257_v2  ;;  %v1262_v7 = vld [vmem:[%s1431_s7 + $0x8] sm:$0xff]   ;;  %v1266_v11 = vld [vmem:[%s1431_s7 + $0x10] sm:$0xff]   ;;  %v363_v34 = vshrl.u32 %v362_v29, 7 }
  0x1f   : > { %v1259_v4 = vld [vmem:[%s1431_s7 + $0x80] sm:$0xff]   ;;  %1126 = vmatpush3.bf16.msra.mxu0 %v1258_v3  ;;  %v1263_v8 = vld [vmem:[%s1431_s7 + $0x88] sm:$0xff]   ;;  %v1267_v12 = vld [vmem:[%s1431_s7 + $0x90] sm:$0xff]   ;;  %v361_v40 = vunpack.c.0.s8 %v360_v38 }
  0x20   : > { %1148 = vmatpush3.bf16.msra.mxu1 %v1259_v4  ;;  %1127 = vmatprep.subr.bf16.mxu0 %v1260_v5  ;;  %v1268_v13 = vld [vmem:[%s1431_s7 + $0x58] sm:$0xff]   ;;  %v1272_v17 = vld [vmem:[%s1431_s7 + $0x60] sm:$0xff]   ;;  %v1276_v21 = vld [vmem:[%s1431_s7 + $0x68] sm:$0xff]  }
  0x21   : > { %1149 = vmatprep.subr.bf16.mxu1 %v1261_v6  ;;  %v1269_v14 = vld [vmem:[%s1431_s7 + $0xd8] sm:$0xff]   ;;  %v1273_v18 = vld [vmem:[%s1431_s7 + $0xe0] sm:$0xff]   ;;  %v1277_v22 = vld [vmem:[%s1431_s7 + $0xe8] sm:$0xff]   ;;  %v1469_v42 = vsub.s32 %v361_v40, %v363_v34 }
  0x22   : > { %v1270_v15 = vld [vmem:[%s1431_s7 + $0x18] sm:$0xff]   ;;  %v1274_v19 = vld [vmem:[%s1431_s7 + $0x20] sm:$0xff]   ;;  %v1278_v23 = vld [vmem:[%s1431_s7 + $0x28] sm:$0xff]  }
  0x23   : > { %1128 = vmatpush3.bf16.msra.mxu0 %v1262_v7  ;;  %v1271_v16 = vld [vmem:[%s1431_s7 + $0x98] sm:$0xff]   ;;  %v1275_v20 = vld [vmem:[%s1431_s7 + $0xa0] sm:$0xff]   ;;  %v1279_v24 = vld [vmem:[%s1431_s7 + $0xa8] sm:$0xff]  }
  0x24   : > { %1150 = vmatpush3.bf16.msra.mxu1 %v1263_v8  ;;  %1129 = vmatprep.subr.bf16.mxu0 %v1264_v9  ;;  %v1280_v25 = vld [vmem:[%s1431_s7 + $0x70] sm:$0xff]   ;;  %v1284_v30 = vld [vmem:[%s1431_s7 + $0x78] sm:$0xff]   ;;  %v226_v35 = vld [vmem:[%s1426_s30] sm:$0xff] }
  0x25   : > { %1151 = vmatprep.subr.bf16.mxu1 %v1265_v10  ;;  %v1281_v26 = vld [vmem:[%s1431_s7 + $0xf0] sm:$0xff]   ;;  %v1285_v31 = vld [vmem:[%s1431_s7 + $0xf8] sm:$0xff]   ;;  %v1289_v36 = vld [vmem:[%s1431_s7 + $0x140] sm:$0xff]   ;;  %v358_v41 = vcombine.high %v226_v35, %v226_v35  ;;  %v365_v43 = vrot.slane %v226_v35, %v1469_v42 }
  0x26   : > { %v1282_v27 = vld [vmem:[%s1431_s7 + $0x30] sm:$0xff]   ;;  %v1286_v32 = vld [vmem:[%s1431_s7 + $0x38] sm:$0xff]   ;;  %v1290_v39 = vld [vmem:[%s1431_s7 + $0x1c0] sm:$0xff]  }
  0x27   : > { %1130 = vmatpush3.bf16.msra.mxu0 %v1266_v11  ;;  %v1283_v28 = vld [vmem:[%s1431_s7 + $0xb0] sm:$0xff]   ;;  %v1287_v33 = vld [vmem:[%s1431_s7 + $0xb8] sm:$0xff]   ;;  %v372_v44 = vrot.slane %v358_v41, %v1469_v42  ;;  %v1291_v45 = vld [vmem:[%s1431_s7 + $0x100] sm:$0xff]   ;;  %v373_v47 = vcombine.high %v365_v43, %v365_v43 }
  0x28   : > { %1152 = vmatpush3.bf16.msra.mxu1 %v1267_v12  ;;  %1131 = vmatprep.subr.bf16.mxu0 %v1268_v13  ;;  %v1292_v46 = vld [vmem:[%s1431_s7 + $0x180] sm:$0xff]   ;;  %v1293_v49 = vld [vmem:[%s1431_s7 + $0x148] sm:$0xff]   ;;  %v1297_v53 = vld [vmem:[%s1431_s7 + $0x150] sm:$0xff]  }
  0x29   : > { %1153 = vmatprep.subr.bf16.mxu1 %v1269_v14  ;;  %v374_v48 = vcombine.high %v372_v44, %v372_v44  ;;  %v1294_v50 = vld [vmem:[%s1431_s7 + $0x1c8] sm:$0xff]   ;;  %816 = vmatprep.mubr.bf16.mxu0 %v373_v47  ;;  %v1298_v54 = vld [vmem:[%s1431_s7 + $0x1d0] sm:$0xff]   ;;  %v1301_v57 = vld [vmem:[%s1431_s7 + $0x158] sm:$0xff]  }
  0x2a   : > { %v1295_v51 = vld [vmem:[%s1431_s7 + $0x108] sm:$0xff]   ;;  %v1299_v55 = vld [vmem:[%s1431_s7 + $0x110] sm:$0xff]   ;;  %v1302_v58 = vld [vmem:[%s1431_s7 + $0x1d8] sm:$0xff]  }
  0x2b   : > { %1132 = vmatpush3.bf16.msra.mxu0 %v1270_v15  ;;  %856 = vmatprep.mubr.bf16.mxu1 %v374_v48  ;;  %v1296_v52 = vld [vmem:[%s1431_s7 + $0x188] sm:$0xff]   ;;  %v1300_v56 = vld [vmem:[%s1431_s7 + $0x190] sm:$0xff]   ;;  %v1303_v59 = vld [vmem:[%s1431_s7 + $0x118] sm:$0xff]  }
  0x2c   : > { %1154 = vmatpush3.bf16.msra.mxu1 %v1271_v16  ;;  %1133 = vmatprep.subr.bf16.mxu0 %v1272_v17  ;;  %v1304_v60 = vld [vmem:[%s1431_s7 + $0x198] sm:$0xff]   ;;  %v1305_v61 = vld [vmem:[%s1431_s7 + $0x160] sm:$0xff]   ;;  %v1309_v1 = vld [vmem:[%s1431_s7 + $0x168] sm:$0xff]  }
  0x2d   : > { %1155 = vmatprep.subr.bf16.mxu1 %v1273_v18  ;;  %v1306_v62 = vld [vmem:[%s1431_s7 + $0x1e0] sm:$0xff]   ;;  %v1310_v2 = vld [vmem:[%s1431_s7 + $0x1e8] sm:$0xff]   ;;  %v1313_v5 = vld [vmem:[%s1431_s7 + $0x170] sm:$0xff]  }
  0x2e   : > { %v1307_v63 = vld [vmem:[%s1431_s7 + $0x120] sm:$0xff]   ;;  %v1311_v3 = vld [vmem:[%s1431_s7 + $0x128] sm:$0xff]   ;;  %v1314_v6 = vld [vmem:[%s1431_s7 + $0x1f0] sm:$0xff]  }
  0x2f   : > { %1134 = vmatpush3.bf16.msra.mxu0 %v1274_v19  ;;  %v1308_v0 = vld [vmem:[%s1431_s7 + $0x1a0] sm:$0xff]   ;;  %v1312_v4 = vld [vmem:[%s1431_s7 + $0x1a8] sm:$0xff]   ;;  %v1315_v8 = vld [vmem:[%s1431_s7 + $0x130] sm:$0xff]  }
  0x30   : > { %1156 = vmatpush3.bf16.msra.mxu1 %v1275_v20  ;;  %1135 = vmatprep.subr.bf16.mxu0 %v1276_v21  ;;  %v227_v7 = vld [vmem:[%s1426_s30 + $0x8] sm:$0xff]  ;;  %v1316_v9 = vld [vmem:[%s1431_s7 + $0x1b0] sm:$0xff]   ;;  %v1317_v12 = vld [vmem:[%s1431_s7 + $0x178] sm:$0xff]  }
  0x31   : > { %1157 = vmatprep.subr.bf16.mxu1 %v1277_v22  ;;  %v382_v10 = vrot.slane %v227_v7, %v1469_v42  ;;  %v375_v11 = vcombine.high %v227_v7, %v227_v7  ;;  %v1318_v13 = vld [vmem:[%s1431_s7 + $0x1f8] sm:$0xff]   ;;  %v225_v41 = vld [vmem:[#allocation2] sm:$0xf] }
  0x32   : > { %v1319_v16 = vld [vmem:[%s1431_s7 + $0x138] sm:$0xff]  }
  0x33   : > { %1136 = vmatpush3.bf16.msra.mxu0 %v1278_v23  ;;  %v390_v14 = vcombine.high %v382_v10, %v382_v10  ;;  %v389_v15 = vrot.slane %v375_v11, %v1469_v42  ;;  %v1320_v17 = vld [vmem:[%s1431_s7 + $0x1b8] sm:$0xff]  }
  0x34   : > { %1158 = vmatpush3.bf16.msra.mxu1 %v1279_v24  ;;  %1137 = vmatprep.subr.bf16.mxu0 %v1280_v25 }
  0x35   : > { %1159 = vmatprep.subr.bf16.mxu1 %v1281_v26  ;;  %v391_v18 = vcombine.high %v389_v15, %v389_v15 }
  0x37   : > { %1138 = vmatpush3.bf16.msra.mxu0 %v1282_v27 }
  0x38   : > { %1160 = vmatpush3.bf16.msra.mxu1 %v1283_v28  ;;  %1139 = vmatprep.subr.bf16.mxu0 %v1284_v30 }
  0x39   : > { %1161 = vmatprep.subr.bf16.mxu1 %v1285_v31 }
  0x3b   : > { %1140 = vmatpush3.bf16.msra.mxu0 %v1286_v32 }
  0x3c   : > { %1162 = vmatpush3.bf16.msra.mxu1 %v1287_v33  ;;  %1169 = vmatprep.subr.bf16.mxu0 %v1289_v36 }
  0x3d   : > { %1191 = vmatprep.subr.bf16.mxu1 %v1290_v39 }
  0x3e   : > { %817 = vmatmul.mubr.bf16.vlgmr.msra.gmra.mrb[0].mxu0 %v365_v43 }
  0x3f   : > { %857 = vmatmul.mubr.bf16.vlgmr.msra.gmra.mrb[0].mxu1 %v372_v44  ;;  %1170 = vmatpush3.bf16.msra.mxu0 %v1291_v45  ;;  %v1122_v45 = vld [vmem:[%s1528_s2] ss:$0 sm:$0xff] (!%p1121_p9) }
  0x40   : > { %1192 = vmatpush3.bf16.msra.mxu1 %v1292_v46  ;;  %1171 = vmatprep.subr.bf16.mxu0 %v1293_v49 }
  0x41   : > { %1193 = vmatprep.subr.bf16.mxu1 %v1294_v50  ;;  %896 = vmatprep.mubr.bf16.mxu0 %v390_v14 }
  0x42   : > { %936 = vmatprep.mubr.bf16.mxu1 %v391_v18 }
  0x43   : > { %1172 = vmatpush3.bf16.msra.mxu0 %v1295_v51 }
  0x44   : > { %1194 = vmatpush3.bf16.msra.mxu1 %v1296_v52  ;;  %1173 = vmatprep.subr.bf16.mxu0 %v1297_v53 }
  0x45   : > { %1195 = vmatprep.subr.bf16.mxu1 %v1298_v54 }
  0x47   : > { %1174 = vmatpush3.bf16.msra.mxu0 %v1299_v55 }
  0x48   : > { %1196 = vmatpush3.bf16.msra.mxu1 %v1300_v56  ;;  %1175 = vmatprep.subr.bf16.mxu0 %v1301_v57 }
  0x49   : > { %1197 = vmatprep.subr.bf16.mxu1 %v1302_v58 }
  0x4b   : > { %1176 = vmatpush3.bf16.msra.mxu0 %v1303_v59 }
  0x4c   : > { %1198 = vmatpush3.bf16.msra.mxu1 %v1304_v60  ;;  %1177 = vmatprep.subr.bf16.mxu0 %v1305_v61 }
  0x4d   : > { %1199 = vmatprep.subr.bf16.mxu1 %v1306_v62 }
  0x4f   : > { %1178 = vmatpush3.bf16.msra.mxu0 %v1307_v63 }
  0x50   : > { %1200 = vmatpush3.bf16.msra.mxu1 %v1308_v0  ;;  %1179 = vmatprep.subr.bf16.mxu0 %v1309_v1 }
  0x51   : > { %1201 = vmatprep.subr.bf16.mxu1 %v1310_v2 }
  0x53   : > { %1180 = vmatpush3.bf16.msra.mxu0 %v1311_v3 }
  0x54   : > { %1202 = vmatpush3.bf16.msra.mxu1 %v1312_v4  ;;  %1181 = vmatprep.subr.bf16.mxu0 %v1313_v5 }
  0x55   : > { %1203 = vmatprep.subr.bf16.mxu1 %v1314_v6 }
  0x57   : > { %1182 = vmatpush3.bf16.msra.mxu0 %v1315_v8 }
  0x58   : > { %1204 = vmatpush3.bf16.msra.mxu1 %v1316_v9  ;;  %1183 = vmatprep.subr.bf16.mxu0 %v1317_v12 }
  0x59   : > { %1205 = vmatprep.subr.bf16.mxu1 %v1318_v13 }
  0x5b   : > { %1184 = vmatpush3.bf16.msra.mxu0 %v1319_v16 }
  0x5c   : > { %1206 = vmatpush3.bf16.msra.mxu1 %v1320_v17 }
  0x5e   : > { %897 = vmatmul.mubr.bf16.vlgmr.msra.gmra.mrb[4].mxu0 %v382_v10 }
  0x5f   : > { %937 = vmatmul.mubr.bf16.vlgmr.msra.gmra.mrb[4].mxu1 %v389_v15 }
 0x111   : > { %v1141_v19 = vpop.f32.mrb[0].mxu0 }
 0x112   : > { %v1163_v20 = vpop.f32.mrb[0].mxu1  ;;  %v1142_v21 = vpop.f32.mrb[1].mxu0 }
 0x113   : > { %v1164_v22 = vpop.f32.mrb[1].mxu1  ;;  %v1143_v23 = vadd.f32 %v1142_v21, %v1141_v19  ;;  %v1144_v25 = vpop.f32.mrb[2].mxu0 }
 0x114   : > { %v1165_v24 = vadd.f32 %v1164_v22, %v1163_v20  ;;  %v1166_v26 = vpop.f32.mrb[2].mxu1  ;;  %v1145_v27 = vpop.f32.mrb[3].mxu0 }
 0x115   : > { %v1167_v28 = vpop.f32.mrb[3].mxu1 }
 0x116   : > { %v859_v29 = vadd.f32 %v1165_v24, %v1143_v23 }
 0x131   : > { %v1185_v30 = vpop.f32.mrb[4].mxu0 }
 0x132   : > { %v1207_v31 = vpop.f32.mrb[4].mxu1  ;;  %v1186_v32 = vpop.f32.mrb[5].mxu0 }
 0x133   : > { %v1208_v33 = vpop.f32.mrb[5].mxu1  ;;  %v1187_v34 = vadd.f32 %v1186_v32, %v1185_v30  ;;  %v1188_v36 = vpop.f32.mrb[6].mxu0 }
 0x134   : > { %v1209_v35 = vadd.f32 %v1208_v33, %v1207_v31  ;;  %v1210_v37 = vpop.f32.mrb[6].mxu1  ;;  %v1189_v38 = vpop.f32.mrb[7].mxu0 }
 0x135   : > { %v1211_v39 = vpop.f32.mrb[7].mxu1  ;;  %v899_v40 = vadd.f32 %v1187_v34, %v859_v29  ;;  %949 = sbr.rel (%p1121_p9) target bundleno = 331 (0x14b), region = 40 }
 0x137   : > { %v939_v42 = vadd.f32 %v1209_v35, %v899_v40 }
 0x139   : > { %v944_v43 = vadd.f32 %v939_v42, %v225_v41 }
 0x13b   : > { %945 = vst [vmem:[#allocation2] sm:$0xf] %v944_v43 }
 0x142   : > { %v950_v44 = vld [vmem:[#allocation2] sm:$0xf] }
 0x143   : > { %v958_v46 = vadd.f32 %v1122_v45, %v950_v44 }
 0x145   : > { %vm959_vm0 = vcmp.gt.f32.partialorder %v958_v46, 0.0  ;;  %v960_v47 = vmul.f32 0.1, %v958_v46 }
 0x147   : > { %v961_v48 = vsel %vm959_vm0, %v958_v46, %v960_v47 }
 0x148   : > { %v962_v49 = vpack.c.bf16 %v961_v48, %v961_v48 }
 0x14a   : > { %963 = vst [vmem:[%s1421_s26] sm:$0x3] %v962_v49 }
 0x14b PF: > { %s13_s16 = sadd.s32 1, %s1360_s16   ;;  %s1530_s12 = smov %s1352_s14 }
 0x14c   : > { %p10_p10 = scmp.ge.s32.totalorder %s13_s16, 8   ;;  %s1531_s13 = smov %s1356_s15 }
 0x14d   : > { %s1532_s14 = smov %s1535_s17  ;;  %s1533_s15 = smov %s1539_s18 }
 0x14e   :  { %12 = sbr.rel (!%p10_p10) target bundleno = 3 (0x3), region = 73 }

// kernel: yolo_forward.3
= control target key start
LH: loop header
LB: loop body
LE: loop exit
PB: predicated region body
PF: predicated region fallthrough
CT: control target
= control target key end

     0   :  { %s3735_s29 = smov 0   ;;  %s4525_s0 = inlined_call_operand.vmem [shape: bf16[2,4,128], index: 0, kind: input, shape index: {}]   ;;  %s4526_s1 = inlined_call_operand.vmem [shape: f32[9,4,1], index: 1, kind: input, shape index: {}]   ;;  %s4527_s2 = inlined_call_operand.vmem [shape: bf16[128,64], index: 2, kind: input, shape index: {}]   ;;  %s4528_s3 = inlined_call_operand.vmem [shape: f32[1,64], index: 3, kind: input, shape index: {}]   ;;  %s4529_s4 = inlined_call_operand.vmem [shape: bf16[576,128], index: 4, kind: input, shape index: {}]   ;;  %s4530_s5 = inlined_call_operand.vmem [shape: f32[1,128], index: 5, kind: input, shape index: {}]   ;;  %s4531_s6 = inlined_call_operand.vmem [shape: bf16[128,64], index: 6, kind: input, shape index: {}]   ;;  %s4532_s7 = inlined_call_operand.vmem [shape: f32[1,64], index: 7, kind: input, shape index: {}]   ;;  %s4533_s8 = inlined_call_operand.vmem [shape: bf16[576,128], index: 8, kind: input, shape index: {}]   ;;  %s4534_s9 = inlined_call_operand.vmem [shape: f32[1,128], index: 9, kind: input, shape index: {}]   ;;  %s4535_s10 = inlined_call_operand.vmem [shape: bf16[1152,128], index: 10, kind: input, shape index: {}]   ;;  %s4536_s11 = inlined_call_operand.vmem [shape: f32[1,128], index: 11, kind: input, shape index: {}]   ;;  %s4537_s12 = inlined_call_operand.vmem [shape: bf16[128,128], index: 12, kind: input, shape index: {}]   ;;  %s4538_s13 = inlined_call_operand.vmem [shape: f32[1,128], index: 13, kind: input, shape index: {}]   ;;  %s4539_s14 = inlined_call_operand.vmem [shape: f32[2,4,128], index: 14, kind: output, shape index: {}]  }
   0x1 LB: > { %s2915_s30 = sadd.s32 4294967295, %s3654_s29   ;;  %p2919_p0 = scmp.ge.s32.totalorder %s3654_s29, 1  ;;  %s3654_s29 = sphi %s3735_s29, %s24_s29  }
   0x2   : > { %p411_p1 = scmp.lt.s32.totalorder %s3654_s29, 3 }
   0x4   : > { %p412_p2 = pnand %p2919_p0, %p411_p1 }
   0x5   : > { %v3476_v0 = vld [vmem:[%s4527_s2] sm:$0xff] (!%p412_p2)   ;;  %v3656_v1 = vmov (!%p412_p2), 0.0   ;;  %v3477_v2 = vld [vmem:[%s4527_s2 + $0x8] sm:$0xff] (!%p412_p2)   ;;  %vm3657_vm0 = vmmov (!%p412_p2), 0   ;;  %v3658_v3 = vmov (!%p412_p2), 0   ;;  %p455_p3 = scmp.lt.s32.totalorder (!%p412_p2), %s2915_s30, 1 }
   0x6   : > { %415 = sbr.rel (%p412_p2) target bundleno = 1741 (0x6cd), region = 76  ;;  %3358 = vmatprep.subr.bf16.mxu0 (!%p412_p2), %v3656_v1  ;;  %1881 = vst [vmem:[#allocation2 + $0x17] sm:$0x1] (!%p412_p2), %v3656_v1  ;;  %1895 = vst [vmem:[#allocation2 + $0x1b] sm:$0x1] (!%p412_p2), %v3656_v1  ;;  %3374 = vmatprep.mubr.msk.bf16.mxu0 (!%p412_p2), %vm3657_vm0, %v3656_v1  ;;  %v3478_v4 = vld [vmem:[%s4527_s2 + $0x10] sm:$0xff] (!%p412_p2)  }
   0x7   : > { %1909 = vst [vmem:[#allocation2 + $0x1c] sm:$0xc] (!%p412_p2), %v3656_v1  ;;  %1923 = vst [vmem:[#allocation2 + $0x20] sm:$0xe] (!%p412_p2), %v3656_v1  ;;  %3359 = vmatpush3.bf16.msra.mxu0 (!%p412_p2), %v3476_v0  ;;  %3474 = vset.pattern.permute.xlu0 (!%p412_p2), %v3658_v3  ;;  %v2931_v5 = vld [vmem:[%s4526_s1 + $0x4] sm:$0xf] (!%p412_p2) }
   0x8   : > { %3360 = vmatprep.subr.bf16.mxu0 (!%p412_p2), %v3656_v1  ;;  %3475 = vset.pattern.permute.xlu1 (!%p412_p2), %v3658_v3  ;;  %v3479_v6 = vld [vmem:[%s4527_s2 + $0x18] sm:$0xff] (!%p412_p2)   ;;  %v2935_v7 = vld [vmem:[%s4526_s1 + $0x14] sm:$0xf] (!%p412_p2)  ;;  %v2933_v8 = vld [vmem:[%s4526_s1 + $0xc] sm:$0xf] (!%p412_p2)  ;;  %vm589_vm1 = vcmask (!%p412_p2), 516096  }
   0x9   : > { %597 = vperm.xlu0 (!%p412_p2), %3474, %v2931_v5   ;;  %657 = vperm.xlu1 (!%p412_p2), %3475, %v2935_v7   ;;  %v2939_v9 = vld [vmem:[%s4526_s1 + $0x1c] sm:$0xf] (!%p412_p2)  ;;  %v3480_v10 = vld [vmem:[%s4527_s2 + $0x20] sm:$0xff] (!%p412_p2)   ;;  %v2932_v11 = vld [vmem:[%s4526_s1 + $0x8] sm:$0xf] (!%p412_p2)  ;;  %vm624_vm2 = vcmask (!%p412_p2), 1040896  }
   0xa   : > { %v581_v12 = vld [vmem:[%s4526_s1] sm:$0xf] (!%p412_p2)  ;;  %v3481_v13 = vld [vmem:[%s4527_s2 + $0x28] sm:$0xff] (!%p412_p2)   ;;  %v2937_v14 = vld [vmem:[%s4526_s1 + $0x18] sm:$0xf] (!%p412_p2)  ;;  %vm622_vm3 = vcmask (!%p412_p2), 519169  }
   0xb   : > { %3361 = vmatpush3.bf16.msra.mxu0 (!%p412_p2), %v3477_v2  ;;  %v3482_v15 = vld [vmem:[%s4527_s2 + $0x30] sm:$0xff] (!%p412_p2)   ;;  %v3483_v16 = vld [vmem:[%s4527_s2 + $0x38] sm:$0xff] (!%p412_p2)   ;;  %609 = vst.msk [vmem:[#allocation2 + $0x4] sm:$0x1] (!%p412_p2), %vm589_vm1, %v3656_v1  ;;  %670 = vst.msk [vmem:[#allocation2 + $0xf] sm:$0x1] (!%p412_p2), %vm589_vm1, %v3656_v1 }
   0xc   : > { %3362 = vmatprep.subr.bf16.mxu0 (!%p412_p2), %v3656_v1  ;;  %625 = vst.msk [vmem:[#allocation2 + $0x4] sm:$0x1] (!%p412_p2), %vm624_vm2, %v3656_v1  ;;  %vm579_vm4 = vcmask (!%p412_p2), 518144   ;;  %v3484_v18 = vld [vmem:[%s4529_s4 + $0x40] sm:$0xff] (!%p412_p2)   ;;  %v3486_v20 = vld [vmem:[%s4529_s4 + $0x48] sm:$0xff] (!%p412_p2)   ;;  %v3488_v22 = vld [vmem:[%s4529_s4 + $0x50] sm:$0xff] (!%p412_p2)  }
   0xd   : > { %s4541_s30 = smov (!%p455_p3, %s2915_s30), 1  ;;  %630 = vperm.xlu0 %3474, %v2933_v8   ;;  %690 = vperm.xlu1 %3475, %v2939_v9   ;;  %702 = vst.msk [vmem:[#allocation2 + $0x10] sm:$0xe] %vm622_vm3, %v3656_v1  ;;  %v3485_v19 = vld [vmem:[%s4529_s4] sm:$0xff]   ;;  %v3487_v21 = vld [vmem:[%s4529_s4 + $0x8] sm:$0xff]   ;;  %v3489_v23 = vld [vmem:[%s4529_s4 + $0x10] sm:$0xff]  }
   0xe   : > { %s2920_s15 = sshll.u32 %s4541_s30, 1  ;;  %580 = vst.msk [vmem:[#allocation2] sm:$0x7] %vm579_vm4, %v3656_v1  ;;  %3145 = vmatprep.subr.bf16.mxu1 %v3484_v18  ;;  %v3490_v24 = vld [vmem:[%s4529_s4 + $0x58] sm:$0xff]   ;;  %v3492_v26 = vld [vmem:[%s4529_s4 + $0x60] sm:$0xff]   ;;  %vm591_vm5 = vcmask 1041920  }
   0xf   : > { %3363 = vmatpush3.bf16.msra.mxu0 %v3478_v4  ;;  %s458_s20 = scalar_lea.vmem %s4525_s0, %s2920_s15  ;;  %3146 = vmatpush3.bf16.msra.mxu1 %v3485_v19  ;;  %v3491_v25 = vld [vmem:[%s4529_s4 + $0x18] sm:$0xff]   ;;  %v3493_v27 = vld [vmem:[%s4529_s4 + $0x20] sm:$0xff]   ;;  %v3494_v33 = vld [vmem:[%s4529_s4 + $0x68] sm:$0xff]   ;;  %592 = vst.msk [vmem:[#allocation2] sm:$0x3] %vm591_vm5, %v3656_v1  ;;  %s3659_s25 = smov 64  }
  0x10   : > { %3364 = vmatprep.subr.bf16.mxu0 %v3656_v1  ;;  %v464_v17 = vld [vmem:[%s458_s20] sm:$0x3]  ;;  %3147 = vmatprep.subr.bf16.mxu1 %v3486_v20  ;;  %v3495_v35 = vld [vmem:[%s4529_s4 + $0x28] sm:$0xff]   ;;  %v3498_v42 = vld [vmem:[%s4529_s4 + $0x70] sm:$0xff]   ;;  %vm607_vm7 = vcmask 1043970   ;;  %vm640_vm8 = vcmask 1043969  }
  0x11   : > { %614 = vperm.xlu0 %3474, %v2932_v11   ;;  %584 = vperm.xlu1 %3475, %v581_v12   ;;  %v2922_v34 = vld [vmem:[%s4528_s3] ss:$0 sm:$0xff]  ;;  %v3499_v46 = vld [vmem:[%s4529_s4 + $0x30] sm:$0xff]   ;;  %v3500_v47 = vld [vmem:[%s4529_s4 + $0xc8] sm:$0xff]   ;;  %vm650_vm9 = vcmask 519168   ;;  %vm668_vm10 = vcmask 1042944  }
  0x12   : > { %v3496_v36 = vld [vmem:[%s4529_s4 + $0xc0] sm:$0xff]   ;;  %v3501_v50 = vld [vmem:[%s4529_s4 + $0x88] sm:$0xff]   ;;  %v3502_v56 = vld [vmem:[%s4529_s4 + $0x78] sm:$0xff]   ;;  %vm1026_vm11 = vcmask 523264   ;;  %s2921_s23 = sshll.u32 %s4541_s30, 2 }
  0x13   : > { %3365 = vmatpush3.bf16.msra.mxu0 %v3479_v6  ;;  %3148 = vmatpush3.bf16.msra.mxu1 %v3487_v21  ;;  %v3497_v38 = vld [vmem:[%s4529_s4 + $0x80] sm:$0xff]   ;;  %v3503_v60 = vld [vmem:[%s4529_s4 + $0x38] sm:$0xff]   ;;  %v3504_v61 = vld [vmem:[%s4529_s4 + $0xd0] sm:$0xff]   ;;  %s462_s28 = scalar_lea.vmem %s4539_s14, %s2921_s23 }
  0x14   : > { %3366 = vmatprep.subr.bf16.mxu0 %v3656_v1  ;;  %3149 = vmatprep.subr.bf16.mxu1 %v3488_v22  ;;  %v3505_v62 = vld [vmem:[%s4529_s4 + $0x90] sm:$0xff]   ;;  %v3506_v8 = vld [vmem:[%s4529_s4 + $0xd8] sm:$0xff]   ;;  %v3511_v18 = vld [vmem:[%s4529_s4 + $0xe8] sm:$0xff]  }
  0x15   : > { %675 = vperm.xlu0 %3474, %v2937_v14   ;;  %v3507_v9 = vld [vmem:[%s4529_s4 + $0x98] sm:$0xff]   ;;  %v2934_v11 = vld [vmem:[%s4526_s1 + $0x10] sm:$0xf]  ;;  %v3508_v14 = vld [vmem:[%s4529_s4 + $0xe0] sm:$0xff]  }
  0x16   : > { %v2992_v19 = vld [vmem:[%s4526_s1 + $0xc] sm:$0xf]  ;;  %v2990_v20 = vld [vmem:[%s4526_s1 + $0x4] sm:$0xf]  ;;  %v3514_v22 = vld [vmem:[%s4529_s4 + $0xf0] sm:$0xff]  }
  0x17   : > { %3367 = vmatpush3.bf16.msra.mxu0 %v3480_v10  ;;  %3150 = vmatpush3.bf16.msra.mxu1 %v3489_v23  ;;  %v2941_v10 = vld [vmem:[%s4526_s1 + $0x20] sm:$0xf]  ;;  %v3513_v21 = vld [vmem:[%s4529_s4 + $0xa8] sm:$0xff]   ;;  %v2998_v23 = vld [vmem:[%s4526_s1 + $0x1c] sm:$0xf] }
  0x18   : > { %3368 = vmatprep.subr.bf16.mxu0 %v3656_v1  ;;  %3151 = vmatprep.subr.bf16.mxu1 %v3490_v24  ;;  %v2994_v24 = vld [vmem:[%s4526_s1 + $0x14] sm:$0xf] }
  0x1b   : > { %3369 = vmatpush3.bf16.msra.mxu0 %v3481_v13  ;;  %3152 = vmatpush3.bf16.msra.mxu1 %v3491_v25  ;;  %v3516_v25 = vld [vmem:[%s4529_s4 + $0xb0] sm:$0xff]  }
  0x1c   : > { %3370 = vmatprep.subr.bf16.mxu0 %v3656_v1  ;;  %3153 = vmatprep.subr.bf16.mxu1 %v3492_v26  ;;  %v3517_v26 = vld [vmem:[%s4529_s4 + $0xf8] sm:$0xff]  }
  0x1f   : > { %3371 = vmatpush3.bf16.msra.mxu0 %v3482_v15  ;;  %3154 = vmatpush3.bf16.msra.mxu1 %v3493_v27  ;;  %v3510_v15 = vld [vmem:[%s4529_s4 + $0xa0] sm:$0xff]   ;;  %v3519_v27 = vld [vmem:[%s4529_s4 + $0xb8] sm:$0xff]  }
  0x20   : > { %3372 = vmatprep.subr.bf16.mxu0 %v3656_v1  ;;  %3155 = vmatprep.subr.bf16.mxu1 %v3494_v33 }
  0x23   : > { %3373 = vmatpush3.bf16.msra.mxu0 %v3483_v16  ;;  %3156 = vmatpush3.bf16.msra.mxu1 %v3495_v35 }
  0x24   : > { %3167 = vmatprep.subr.bf16.mxu0 %v3496_v36  ;;  %3157 = vmatprep.subr.bf16.mxu1 %v3498_v42  ;;  %v3509_v36 = vld [vmem:[%s4529_s4 + $0x100] sm:$0xff]  }
  0x26   : > { %3375 = vmatmul.mubr.bf16.vlgmr.msra.gmra.mrb[0].mxu0 %v464_v17 }
  0x27   : > { %3168 = vmatpush3.bf16.msra.mxu0 %v3497_v38  ;;  %3158 = vmatpush3.bf16.msra.mxu1 %v3499_v46  ;;  %v3512_v38 = vld [vmem:[%s4529_s4 + $0x108] sm:$0xff]  }
  0x28   : > { %3169 = vmatprep.subr.bf16.mxu0 %v3500_v47  ;;  %3159 = vmatprep.subr.bf16.mxu1 %v3502_v56  ;;  %v3521_v56 = vld [vmem:[%s4531_s6 + $0x8] sm:$0xff]  }
  0x2b   : > { %3170 = vmatpush3.bf16.msra.mxu0 %v3501_v50  ;;  %3160 = vmatpush3.bf16.msra.mxu1 %v3503_v60  ;;  %v3525_v60 = vld [vmem:[%s4531_s6 + $0x28] sm:$0xff]  }
  0x2c   : > { %3171 = vmatprep.subr.bf16.mxu0 %v3504_v61  ;;  %3378 = vmatprep.subr.bf16.mxu1 %v3656_v1  ;;  %v3526_v61 = vld [vmem:[%s4531_s6 + $0x30] sm:$0xff]  }
  0x2f   : > { %3172 = vmatpush3.bf16.msra.mxu0 %v3505_v62  ;;  %v3527_v62 = vld [vmem:[%s4531_s6 + $0x38] sm:$0xff]  }
  0x30   : > { %3173 = vmatprep.subr.bf16.mxu0 %v3506_v8 }
  0x33   : > { %3174 = vmatpush3.bf16.msra.mxu0 %v3507_v9 }
  0x34   : > { %3175 = vmatprep.subr.bf16.mxu0 %v3508_v14 }
  0x37   : > { %3176 = vmatpush3.bf16.msra.mxu0 %v3510_v15 }
  0x38   : > { %3177 = vmatprep.subr.bf16.mxu0 %v3511_v18 }
  0x3b   : > { %3178 = vmatpush3.bf16.msra.mxu0 %v3513_v21  ;;  %v3528_v21 = vld [vmem:[%s4533_s8 + $0x40] sm:$0xff]  }
  0x3c   : > { %3179 = vmatprep.subr.bf16.mxu0 %v3514_v22  ;;  %v3529_v22 = vld [vmem:[%s4533_s8] sm:$0xff]  }
  0x3f   : > { %3180 = vmatpush3.bf16.msra.mxu0 %v3516_v25  ;;  %v3532_v25 = vld [vmem:[%s4533_s8 + $0x50] sm:$0xff]  }
  0x40   : > { %3181 = vmatprep.subr.bf16.mxu0 %v3517_v26  ;;  %v3533_v26 = vld [vmem:[%s4533_s8 + $0x10] sm:$0xff]  }
  0x43   : > { %3182 = vmatpush3.bf16.msra.mxu0 %v3519_v27  ;;  %v3534_v27 = vld [vmem:[%s4533_s8 + $0x58] sm:$0xff]  }
  0x44   : > { %3203 = vmatprep.subr.bf16.mxu0 %v3528_v21  ;;  %v3555_v21 = vld [vmem:[%s4533_s8 + $0xe8] sm:$0xff]  }
  0x88   : > { %v598_v28 = vpop.permute.xlu0 %597  ;;  %v3848_v29 = vpop.permute.xlu1 %657 }
  0x89   : > { %v599_v51 = vrot.slane %v598_v28, 2  ;;  %v659_v2 = vrot.slane %v3848_v29, 7  ;;  %v1269_v28 = vld [vmem:[%s4526_s1] sm:$0xf]  ;;  %v2991_v29 = vld [vmem:[%s4526_s1 + $0x8] sm:$0xf] }
  0x8c   : > { %v631_v30 = vpop.permute.xlu0 %630  ;;  %v3850_v31 = vpop.permute.xlu1 %690 }
  0x8d   : > { %v632_v52 = vrot.slane %v631_v30, 1  ;;  %v692_v3 = vrot.slane %v3850_v31, 6  ;;  %v2996_v30 = vld [vmem:[%s4526_s1 + $0x18] sm:$0xf] }
  0x90   : > { %v615_v32 = vpop.permute.xlu0 %614  ;;  %v585_v37 = vpop.permute.xlu1 %584 }
  0x91   : > { %v586_v45 = vrot.slane %v585_v37, 3  ;;  %v616_v53 = vrot.slane %v615_v32, 1 }
  0x94   : > { %v676_v43 = vpop.permute.xlu0 %675 }
  0x95   : > { %v677_v54 = vrot.slane %v676_v43, 7  ;;  %v3515_v43 = vld [vmem:[%s4529_s4 + $0x110] sm:$0xff]  }
  0xf9   : > { %v570_v39 = vpop.f32.mrb[0].mxu0 }
  0xfa   : > { %v571_v40 = vadd.f32 %v2922_v34, %v570_v39  ;;  %v3376_v41 = vpop.f32.mrb[1].mxu0 }
  0xfb   : > { %v573_v44 = vpop.f32.mrb[2].mxu0 }
  0xfc   : > { %vm576_vm6 = vcmp.gt.f32.partialorder %v571_v40, 0.0  ;;  %v577_v48 = vmul.f32 0.1, %v571_v40  ;;  %v3377_v49 = vpop.f32.mrb[3].mxu0 }
  0xfe   : > { %v3881_v55 = vsel %vm576_vm6, %v571_v40, %v577_v48  ;;  %v3518_v48 = vld [vmem:[%s4529_s4 + $0x118] sm:$0xff]  }
  0xff   : > { %v588_v57 = vmul.f32 %v586_v45, %v3881_v55  ;;  %v634_v58 = vmul.f32 %v632_v52, %v3881_v55  ;;  %v601_v59 = vmul.f32 %v599_v51, %v3881_v55  ;;  %v618_v63 = vmul.f32 %v616_v53, %v3881_v55 }
 0x100   : > { %v679_v0 = vmul.f32 %v677_v54, %v3881_v55  ;;  %v694_v12 = vmul.f32 %v692_v3, %v3881_v55  ;;  %v661_v13 = vmul.f32 %v659_v2, %v3881_v55 }
 0x101   : > { %590 = vst.msk [vmem:[#allocation2 + $0x3] sm:$0x1] %vm589_vm1, %v588_v57  ;;  %v636_v4 = vrot.slane %v634_v58, 7  ;;  %v603_v5 = vrot.slane %v601_v59, 6  ;;  %v620_v6 = vrot.slane %v618_v63, 7  ;;  %v3522_v57 = vld [vmem:[%s4531_s6 + $0x10] sm:$0xff]  }
 0x102   : > { %v2938_v7 = vrot.slane %v679_v0, 9  ;;  %v2940_v16 = vrot.slane %v694_v12, 10  ;;  %v2936_v17 = vrot.slane %v661_v13, 9  ;;  %v3523_v58 = vld [vmem:[%s4531_s6 + $0x18] sm:$0xff]   ;;  %v3524_v59 = vld [vmem:[%s4531_s6 + $0x20] sm:$0xff]  }
 0x103   : > { %637 = vrot.lane.b32.xlu0 %v636_v4, %s3659_s25  ;;  %604 = vrot.lane.b32.xlu1 %v603_v5, %s3659_s25  ;;  %623 = vst.msk [vmem:[#allocation2 + $0x4] sm:$0xe] %vm622_vm3, %v620_v6  ;;  %v2943_v5 = vld [vmem:[%s4530_s5] ss:$0 sm:$0xff] }
 0x104   : > { %684 = vst.msk [vmem:[#allocation2 + $0xc] sm:$0x7] %vm579_vm4, %v2938_v7 }
 0x105   : > { %685 = vst.msk [vmem:[#allocation2 + $0xc] sm:$0xc] %vm607_vm7, %v3656_v1 }
 0x107   : > { %707 = vperm.xlu0 %3474, %v2941_v10   ;;  %646 = vperm.xlu1 %3475, %v2934_v11  }
 0x10b   : > { %698 = vrot.lane.b32.xlu0 %v2940_v16, %s3659_s25  ;;  %665 = vrot.lane.b32.xlu1 %v2936_v17, %s3659_s25 }
 0x10f   : > { %1310 = vperm.xlu0 %3474, %v2992_v19   ;;  %1282 = vperm.xlu1 %3475, %v2990_v20  }
 0x113   : > { %1363 = vperm.xlu0 %3474, %v2998_v23   ;;  %1333 = vperm.xlu1 %3475, %v2994_v24   ;;  %v3530_v23 = vld [vmem:[%s4533_s8 + $0x48] sm:$0xff]  }
 0x114   : > { %v3531_v24 = vld [vmem:[%s4533_s8 + $0x8] sm:$0xff]  }
 0x117   : > { %1272 = vperm.xlu0 %3474, %v1269_v28   ;;  %1297 = vperm.xlu1 %3475, %v2991_v29   ;;  %v3535_v28 = vld [vmem:[%s4533_s8 + $0x18] sm:$0xff]   ;;  %v3536_v29 = vld [vmem:[%s4533_s8 + $0x60] sm:$0xff]  }
 0x11b   : > { %1349 = vperm.xlu1 %3475, %v2996_v30   ;;  %v3537_v30 = vld [vmem:[%s4533_s8 + $0x20] sm:$0xff]  }
 0x175   : > { %v638_v31 = vpop.permute.xlu0 %637  ;;  %v605_v32 = vpop.permute.xlu1 %604 }
 0x176   : > { %641 = vst.msk [vmem:[#allocation2 + $0x4] sm:$0xe] %vm640_vm8, %v638_v31 }
 0x177   : > { %608 = vst.msk [vmem:[#allocation2] sm:$0xc] %vm607_vm7, %v605_v32 }
 0x17e   : > { %v717_v33 = vld [vmem:[#allocation2] sm:$0xff] }
 0x17f   : > { %1268 = vst.msk [vmem:[#allocation2] sm:$0x7] %vm579_vm4, %v3656_v1  ;;  %v722_v34 = vcombine.high %v717_v33, %v717_v33  ;;  %v726_v37 = vpack.c.bf16 %v717_v33, %v717_v33 }
 0x180   : > { %1293 = vst.msk [vmem:[#allocation2 + $0x4] sm:$0x1] %vm589_vm1, %v3656_v1 }
 0x181   : > { %1278 = vst.msk [vmem:[#allocation2] sm:$0x3] %vm591_vm5, %v3656_v1  ;;  %v727_v35 = vpack.c.bf16 %v722_v34, %v722_v34 }
 0x182   : > { %1306 = vst.msk [vmem:[#allocation2 + $0x4] sm:$0x1] %vm624_vm2, %v3656_v1 }
 0x183   : > { %1062 = vmatprep.mubr.bf16.mxu1 %v727_v35 }
 0x184   : > { %1063 = vmatmul.mubr.bf16.vlgmr.msra.gmra.mrb[0].mxu1 %v726_v37  ;;  %v2981_v37 = vld [vmem:[%s4532_s7] ss:$0 sm:$0xff] }
 0x185   : > { %3379 = vmatpush3.bf16.msra.mxu1 %v3509_v36  ;;  %3386 = vmatprep.mubr.msk.bf16.mxu1 %vm3657_vm0, %v3656_v1  ;;  %v3538_v36 = vld [vmem:[%s4533_s8 + $0x68] sm:$0xff]  }
 0x186   : > { %3380 = vmatprep.subr.bf16.mxu1 %v3656_v1  ;;  %v708_v39 = vpop.permute.xlu0 %707  ;;  %v647_v40 = vpop.permute.xlu1 %646 }
 0x187   : > { %v709_v41 = vrot.slane %v708_v39, 5  ;;  %v649_v42 = vmul.f32 %v647_v40, %v3881_v55  ;;  %v3540_v39 = vld [vmem:[%s4533_s8 + $0xc0] sm:$0xff]  }
 0x188   : > { %v3541_v40 = vld [vmem:[%s4533_s8 + $0x80] sm:$0xff]  }
 0x189   : > { %3381 = vmatpush3.bf16.msra.mxu1 %v3512_v38  ;;  %v711_v44 = vmul.f32 %v709_v41, %v3881_v55  ;;  %651 = vst.msk [vmem:[#allocation2 + $0x8] sm:$0xf] %vm650_vm9, %v649_v42  ;;  %v3520_v55 = vld [vmem:[%s4531_s6] sm:$0xff]   ;;  %v3539_v38 = vld [vmem:[%s4533_s8 + $0x28] sm:$0xff]  }
 0x18a   : > { %3382 = vmatprep.subr.bf16.mxu1 %v3656_v1  ;;  %652 = vst.msk [vmem:[#allocation2 + $0xb] sm:$0x1] %vm624_vm2, %v3656_v1  ;;  %v699_v45 = vpop.permute.xlu0 %698  ;;  %v666_v46 = vpop.permute.xlu1 %665 }
 0x18b   : > { %v2942_v47 = vrot.slane %v711_v44, 11  ;;  %701 = vst.msk [vmem:[#allocation2 + $0xc] sm:$0x3] %vm591_vm5, %v699_v45  ;;  %v3542_v45 = vld [vmem:[%s4533_s8 + $0x70] sm:$0xff]  }
 0x18c   : > { %669 = vst.msk [vmem:[#allocation2 + $0x8] sm:$0x7] %vm668_vm10, %v666_v46 }
 0x18d   : > { %3383 = vmatpush3.bf16.msra.mxu1 %v3515_v43  ;;  %716 = vst.msk [vmem:[#allocation2 + $0x10] sm:$0x1] %vm589_vm1, %v2942_v47 }
 0x18e   : > { %3384 = vmatprep.subr.bf16.mxu1 %v3656_v1  ;;  %v1283_v31 = vpop.permute.xlu1 %1282  ;;  %v1311_v32 = vpop.permute.xlu0 %1310 }
 0x191   : > { %3385 = vmatpush3.bf16.msra.mxu1 %v3518_v48  ;;  %v3543_v48 = vld [vmem:[%s4533_s8 + $0x30] sm:$0xff]  }
 0x192   : > { %3390 = vmatprep.subr.bf16.mxu1 %v3656_v1  ;;  %v4078_v33 = vpop.permute.xlu1 %1333  ;;  %v4080_v34 = vpop.permute.xlu0 %1363 }
 0x193   : > { %v718_v49 = vld [vmem:[#allocation2 + $0x8] sm:$0xff] }
 0x194   : > { %1345 = vst.msk [vmem:[#allocation2 + $0xf] sm:$0x1] %vm589_vm1, %v3656_v1  ;;  %v723_v50 = vcombine.high %v718_v49, %v718_v49  ;;  %v719_v51 = vld [vmem:[#allocation2 + $0x10] sm:$0xf]  ;;  %v728_v54 = vpack.c.bf16 %v718_v49, %v718_v49  ;;  %v3544_v49 = vld [vmem:[%s4533_s8 + $0xc8] sm:$0xff]  }
 0x195   : > { %v730_v53 = vpack.c.bf16 %v719_v51, %v719_v51  ;;  %1375 = vst.msk [vmem:[#allocation2 + $0x10] sm:$0xe] %vm622_vm3, %v3656_v1 }
 0x196   : > { %v729_v52 = vpack.c.bf16 %v723_v50, %v723_v50  ;;  %v1298_v35 = vpop.permute.xlu1 %1297  ;;  %v1273_v42 = vpop.permute.xlu0 %1272 }
 0x197   : > { %3387 = vmatmul.mubr.msk.bf16.vlgmr.msra.gmra.mrb[4].mxu1 %vm1026_vm11, %v730_v53  ;;  %v1312_v53 = vrot.slane %v1311_v32, 1  ;;  %v3044_v32 = vld [vmem:[%s4526_s1 + $0x14] sm:$0xf] }
 0x198   : > { %1102 = vmatprep.mubr.bf16.mxu0 %v729_v52  ;;  %3406 = vmatprep.mubr.msk.bf16.mxu1 %vm3657_vm0, %v3656_v1  ;;  %v3545_v52 = vld [vmem:[%s4533_s8 + $0x88] sm:$0xff]  }
 0x199   : > { %1103 = vmatmul.mubr.bf16.vlgmr.msra.gmra.mrb[4].mxu0 %v728_v54  ;;  %3391 = vmatpush3.bf16.msra.mxu1 %v3520_v55  ;;  %v1284_v54 = vrot.slane %v1283_v31, 2  ;;  %v1274_v55 = vrot.slane %v1273_v42, 3  ;;  %v3043_v31 = vld [vmem:[%s4526_s1 + $0x10] sm:$0xf] }
 0x19a   : > { %3392 = vmatprep.subr.bf16.mxu1 %v3656_v1  ;;  %3204 = vmatpush3.bf16.msra.mxu0 %v3529_v22  ;;  %v1350_v46 = vpop.permute.xlu1 %1349  ;;  %v1825_v22 = vld [vmem:[%s4526_s1] sm:$0xf] }
 0x19b   : > { %3205 = vmatprep.subr.bf16.mxu0 %v3530_v23  ;;  %v3040_v23 = vld [vmem:[%s4526_s1 + $0x4] sm:$0xf] }
 0x19d   : > { %3393 = vmatpush3.bf16.msra.mxu1 %v3521_v56  ;;  %v1299_v56 = vrot.slane %v1298_v35, 1  ;;  %v3050_v35 = vld [vmem:[%s4526_s1 + $0x20] sm:$0xf] }
 0x19e   : > { %3394 = vmatprep.subr.bf16.mxu1 %v3656_v1  ;;  %3206 = vmatpush3.bf16.msra.mxu0 %v3531_v24  ;;  %v3557_v24 = vld [vmem:[%s4533_s8 + $0xa8] sm:$0xff]  }
 0x19f   : > { %3207 = vmatprep.subr.bf16.mxu0 %v3532_v25  ;;  %v3558_v25 = vld [vmem:[%s4533_s8 + $0xf0] sm:$0xff]  }
 0x1a1   : > { %3395 = vmatpush3.bf16.msra.mxu1 %v3522_v57  ;;  %v1351_v57 = vrot.slane %v1350_v46, 7 }
 0x1a2   : > { %3396 = vmatprep.subr.bf16.mxu1 %v3656_v1  ;;  %3208 = vmatpush3.bf16.msra.mxu0 %v3533_v26  ;;  %v3042_v26 = vld [vmem:[%s4526_s1 + $0xc] sm:$0xf] }
 0x1a3   : > { %3209 = vmatprep.subr.bf16.mxu0 %v3534_v27  ;;  %v3041_v27 = vld [vmem:[%s4526_s1 + $0x8] sm:$0xf] }
 0x1a5   : > { %3397 = vmatpush3.bf16.msra.mxu1 %v3523_v58 }
 0x1a6   : > { %3398 = vmatprep.subr.bf16.mxu1 %v3656_v1  ;;  %3210 = vmatpush3.bf16.msra.mxu0 %v3535_v28  ;;  %v3560_v28 = vld [vmem:[%s4533_s8 + $0xb0] sm:$0xff]  }
 0x1a7   : > { %3211 = vmatprep.subr.bf16.mxu0 %v3536_v29  ;;  %v3561_v29 = vld [vmem:[%s4533_s8 + $0xf8] sm:$0xff]  }
 0x1a9   : > { %3399 = vmatpush3.bf16.msra.mxu1 %v3524_v59  ;;  %v3546_v59 = vld [vmem:[%s4533_s8 + $0x78] sm:$0xff]  }
 0x1aa   : > { %3400 = vmatprep.subr.bf16.mxu1 %v3656_v1  ;;  %3212 = vmatpush3.bf16.msra.mxu0 %v3537_v30  ;;  %v3563_v30 = vld [vmem:[%s4533_s8 + $0xb8] sm:$0xff]  }
 0x1ab   : > { %3213 = vmatprep.subr.bf16.mxu0 %v3538_v36 }
 0x1ad   : > { %3401 = vmatpush3.bf16.msra.mxu1 %v3525_v60  ;;  %v3547_v60 = vld [vmem:[%s4533_s8 + $0x38] sm:$0xff]  }
 0x1ae   : > { %3402 = vmatprep.subr.bf16.mxu1 %v3656_v1  ;;  %3214 = vmatpush3.bf16.msra.mxu0 %v3539_v38 }
 0x1af   : > { %3215 = vmatprep.subr.bf16.mxu0 %v3542_v45 }
 0x1b1   : > { %3403 = vmatpush3.bf16.msra.mxu1 %v3526_v61  ;;  %v3548_v61 = vld [vmem:[%s4533_s8 + $0xd0] sm:$0xff]  }
 0x1b2   : > { %3404 = vmatprep.subr.bf16.mxu1 %v3656_v1  ;;  %3216 = vmatpush3.bf16.msra.mxu0 %v3543_v48  ;;  %v3559_v48 = vld [vmem:[%s4533_s8 + $0x110] sm:$0xff]  }
 0x1b3   : > { %3217 = vmatprep.subr.bf16.mxu0 %v3546_v59 }
 0x1b5   : > { %3405 = vmatpush3.bf16.msra.mxu1 %v3527_v62 }
 0x1b6   : > { %3225 = vmatprep.subr.bf16.mxu1 %v3540_v39  ;;  %3218 = vmatpush3.bf16.msra.mxu0 %v3547_v60  ;;  %v3564_v60 = vld [vmem:[%s4535_s10 + $0x40] sm:$0xff]  }
 0x1b7   : > { %3410 = vmatprep.subr.bf16.mxu0 %v3656_v1 }
 0x257   : > { %v3161_v63 = vpop.f32.mrb[0].mxu1 }
 0x258   : > { %v3162_v0 = vpop.f32.mrb[1].mxu1 }
 0x259   : > { %v3163_v2 = vadd.f32 %v3162_v0, %v3161_v63  ;;  %v3164_v3 = vpop.f32.mrb[2].mxu1  ;;  %v3549_v0 = vld [vmem:[%s4533_s8 + $0x90] sm:$0xff]  }
 0x25a   : > { %v3165_v4 = vpop.f32.mrb[3].mxu1 }
 0x25b   : > { %v1065_v11 = vadd.f32 %v3163_v2, %v2943_v5 }
 0x26a   : > { %v1144_v6 = vpop.f32.mrb[4].mxu1 }
 0x26b   : > { %v3388_v8 = vpop.f32.mrb[5].mxu1 }
 0x26c   : > { %v3183_v7 = vpop.f32.mrb[4].mxu0  ;;  %v1147_v10 = vpop.f32.mrb[6].mxu1 }
 0x26d   : > { %v3184_v9 = vpop.f32.mrb[5].mxu0  ;;  %v3389_v14 = vpop.f32.mrb[7].mxu1  ;;  %v1335_v10 = vrot.slane %v4078_v33, 7  ;;  %v3048_v33 = vld [vmem:[%s4526_s1 + $0x1c] sm:$0xf] }
 0x26e   : > { %v3185_v12 = vadd.f32 %v3184_v9, %v3183_v7  ;;  %v3186_v13 = vpop.f32.mrb[6].mxu0  ;;  %v1365_v9 = vrot.slane %v4080_v34, 6  ;;  %v2993_v14 = vld [vmem:[%s4526_s1 + $0x10] sm:$0xf]  ;;  %v3046_v34 = vld [vmem:[%s4526_s1 + $0x18] sm:$0xf] }
 0x26f   : > { %v3187_v15 = vpop.f32.mrb[7].mxu0  ;;  %v3000_v13 = vld [vmem:[%s4526_s1 + $0x20] sm:$0xf] }
 0x270   : > { %v1105_v16 = vadd.f32 %v3185_v12, %v1065_v11  ;;  %v3550_v11 = vld [vmem:[%s4533_s8 + $0xd8] sm:$0xff]  }
 0x271   : > { %v3551_v12 = vld [vmem:[%s4533_s8 + $0x98] sm:$0xff]  }
 0x272   : > { %v1145_v17 = vadd.f32 %v1144_v6, %v1105_v16 }
 0x274   : > { %vm1150_vm12 = vcmp.gt.f32.partialorder %v1145_v17, 0.0  ;;  %v1151_v18 = vmul.f32 0.1, %v1145_v17 }
 0x276   : > { %v1152_v19 = vsel %vm1150_vm12, %v1145_v17, %v1151_v18  ;;  %v3552_v17 = vld [vmem:[%s4533_s8 + $0xe0] sm:$0xff]  }
 0x277   : > { %v1153_v20 = vpack.c.bf16 %v1152_v19, %v1152_v19  ;;  %v3554_v18 = vld [vmem:[%s4533_s8 + $0xa0] sm:$0xff]  }
 0x279   : > { %3407 = vmatmul.mubr.bf16.vlgmr.msra.gmra.mrb[8].mxu1 %v1153_v20 }
 0x27a   : > { %3226 = vmatpush3.bf16.msra.mxu1 %v3541_v40 }
 0x27b   : > { %3227 = vmatprep.subr.bf16.mxu1 %v3544_v49 }
 0x27e   : > { %3228 = vmatpush3.bf16.msra.mxu1 %v3545_v52 }
 0x27f   : > { %3229 = vmatprep.subr.bf16.mxu1 %v3548_v61  ;;  %v3565_v61 = vld [vmem:[%s4535_s10 + $0xc0] sm:$0xff]  }
 0x282   : > { %3230 = vmatpush3.bf16.msra.mxu1 %v3549_v0  ;;  %v3568_v0 = vld [vmem:[%s4535_s10 + $0x48] sm:$0xff]  }
 0x283   : > { %3231 = vmatprep.subr.bf16.mxu1 %v3550_v11  ;;  %v3578_v11 = vld [vmem:[%s4535_s10 + $0x18] sm:$0xff]  }
 0x286   : > { %3232 = vmatpush3.bf16.msra.mxu1 %v3551_v12  ;;  %v3579_v12 = vld [vmem:[%s4535_s10 + $0x98] sm:$0xff]  }
 0x287   : > { %3233 = vmatprep.subr.bf16.mxu1 %v3552_v17  ;;  %v3584_v17 = vld [vmem:[%s4535_s10 + $0x68] sm:$0xff]  }
 0x28a   : > { %3234 = vmatpush3.bf16.msra.mxu1 %v3554_v18  ;;  %v3585_v18 = vld [vmem:[%s4535_s10 + $0xe8] sm:$0xff]  }
 0x28b   : > { %3235 = vmatprep.subr.bf16.mxu1 %v3555_v21  ;;  %v3588_v21 = vld [vmem:[%s4535_s10 + $0x70] sm:$0xff]  }
 0x28e   : > { %3236 = vmatpush3.bf16.msra.mxu1 %v3557_v24  ;;  %v3591_v24 = vld [vmem:[%s4535_s10 + $0xb0] sm:$0xff]  }
 0x28f   : > { %3237 = vmatprep.subr.bf16.mxu1 %v3558_v25  ;;  %v3592_v25 = vld [vmem:[%s4535_s10 + $0x78] sm:$0xff]  }
 0x292   : > { %3238 = vmatpush3.bf16.msra.mxu1 %v3560_v28  ;;  %v3595_v28 = vld [vmem:[%s4535_s10 + $0xb8] sm:$0xff]  }
 0x293   : > { %3239 = vmatprep.subr.bf16.mxu1 %v3561_v29  ;;  %v3598_v29 = vld [vmem:[%s4535_s10 + $0x140] sm:$0xff]  }
 0x296   : > { %3240 = vmatpush3.bf16.msra.mxu1 %v3563_v30  ;;  %v3599_v30 = vld [vmem:[%s4535_s10 + $0x1c0] sm:$0xff]  }
 0x297   : > { %3274 = vmatprep.subr.bf16.mxu1 %v3565_v61 }
 0x34c   : > { %v1259_v41 = vpop.f32.mrb[8].mxu1 }
 0x34d   : > { %v1260_v43 = vadd.f32 %v2981_v37, %v1259_v41  ;;  %v3408_v44 = vpop.f32.mrb[9].mxu1  ;;  %v3553_v41 = vld [vmem:[%s4533_s8 + $0x100] sm:$0xff]  }
 0x34e   : > { %v1262_v47 = vpop.f32.mrb[10].mxu1 }
 0x34f   : > { %vm1265_vm13 = vcmp.gt.f32.partialorder %v1260_v43, 0.0  ;;  %v1266_v50 = vmul.f32 0.1, %v1260_v43  ;;  %v3409_v51 = vpop.f32.mrb[11].mxu1 }
 0x351   : > { %v4109_v58 = vsel %vm1265_vm13, %v1260_v43, %v1266_v50  ;;  %v3556_v43 = vld [vmem:[%s4533_s8 + $0x108] sm:$0xff]  }
 0x352   : > { %v1314_v62 = vmul.f32 %v1312_v53, %v4109_v58  ;;  %v1286_v63 = vmul.f32 %v1284_v54, %v4109_v58  ;;  %v1301_v2 = vmul.f32 %v1299_v56, %v4109_v58  ;;  %v1276_v3 = vmul.f32 %v1274_v55, %v4109_v58  ;;  %v3562_v53 = vld [vmem:[%s4533_s8 + $0x118] sm:$0xff]  }
 0x353   : > { %v1353_v4 = vmul.f32 %v1351_v57, %v4109_v58  ;;  %v1367_v15 = vmul.f32 %v1365_v9, %v4109_v58  ;;  %v1337_v16 = vmul.f32 %v1335_v10, %v4109_v58  ;;  %v3576_v9 = vld [vmem:[%s4535_s10 + $0x58] sm:$0xff]  }
 0x354   : > { %v1316_v5 = vrot.slane %v1314_v62, 7  ;;  %v1288_v6 = vrot.slane %v1286_v63, 6  ;;  %v1303_v7 = vrot.slane %v1301_v2, 7  ;;  %1277 = vst.msk [vmem:[#allocation2 + $0x3] sm:$0x1] %vm589_vm1, %v1276_v3  ;;  %v3566_v62 = vld [vmem:[%s4535_s10] sm:$0xff]  }
 0x355   : > { %v2997_v8 = vrot.slane %v1353_v4, 9  ;;  %v2999_v19 = vrot.slane %v1367_v15, 10  ;;  %v2995_v20 = vrot.slane %v1337_v16, 9  ;;  %v3567_v63 = vld [vmem:[%s4535_s10 + $0x80] sm:$0xff]   ;;  %v3569_v2 = vld [vmem:[%s4535_s10 + $0xc8] sm:$0xff]   ;;  %v3577_v10 = vld [vmem:[%s4535_s10 + $0xd8] sm:$0xff]  }
 0x356   : > { %1317 = vrot.lane.b32.xlu1 %v1316_v5, %s3659_s25  ;;  %1289 = vrot.lane.b32.xlu0 %v1288_v6, %s3659_s25  ;;  %1305 = vst.msk [vmem:[#allocation2 + $0x4] sm:$0xe] %vm622_vm3, %v1303_v7  ;;  %v3570_v3 = vld [vmem:[%s4535_s10 + $0x8] sm:$0xff]   ;;  %v3572_v5 = vld [vmem:[%s4535_s10 + $0x50] sm:$0xff]  }
 0x357   : > { %1358 = vst.msk [vmem:[#allocation2 + $0xc] sm:$0x7] %vm579_vm4, %v2997_v8  ;;  %v3571_v4 = vld [vmem:[%s4535_s10 + $0x88] sm:$0xff]   ;;  %v3573_v6 = vld [vmem:[%s4535_s10 + $0xd0] sm:$0xff]   ;;  %v3582_v15 = vld [vmem:[%s4535_s10 + $0x20] sm:$0xff]  }
 0x358   : > { %1359 = vst.msk [vmem:[#allocation2 + $0xc] sm:$0xc] %vm607_vm7, %v3656_v1  ;;  %v3574_v7 = vld [vmem:[%s4535_s10 + $0x10] sm:$0xff]   ;;  %v3583_v16 = vld [vmem:[%s4535_s10 + $0xa0] sm:$0xff]  }
 0x359   : > { %v3575_v8 = vld [vmem:[%s4535_s10 + $0x90] sm:$0xff]  }
 0x35a   : > { %1379 = vperm.xlu1 %3475, %v3000_v13   ;;  %1324 = vperm.xlu0 %3474, %v2993_v14   ;;  %v3580_v13 = vld [vmem:[%s4535_s10 + $0x60] sm:$0xff]  }
 0x35b   : > { %v3581_v14 = vld [vmem:[%s4535_s10 + $0xe0] sm:$0xff]  }
 0x35e   : > { %1371 = vrot.lane.b32.xlu1 %v2999_v19, %s3659_s25  ;;  %1341 = vrot.lane.b32.xlu0 %v2995_v20, %s3659_s25  ;;  %v3586_v19 = vld [vmem:[%s4535_s10 + $0x28] sm:$0xff]  }
 0x35f   : > { %v3587_v20 = vld [vmem:[%s4535_s10 + $0xa8] sm:$0xff]  }
 0x362   : > { %1828 = vperm.xlu1 %3475, %v1825_v22   ;;  %1838 = vperm.xlu0 %3474, %v3040_v23   ;;  %v3589_v22 = vld [vmem:[%s4535_s10 + $0xf0] sm:$0xff]  }
 0x363   : > { %v3590_v23 = vld [vmem:[%s4535_s10 + $0x30] sm:$0xff]  }
 0x366   : > { %1864 = vperm.xlu1 %3475, %v3042_v26   ;;  %1851 = vperm.xlu0 %3474, %v3041_v27   ;;  %v3593_v26 = vld [vmem:[%s4535_s10 + $0xf8] sm:$0xff]  }
 0x367   : > { %v3594_v27 = vld [vmem:[%s4535_s10 + $0x38] sm:$0xff]  }
 0x36a   : > { %1876 = vperm.xlu1 %3475, %v3043_v31   ;;  %1885 = vperm.xlu0 %3474, %v3044_v32  }
 0x36e   : > { %1913 = vperm.xlu1 %3475, %v3048_v33   ;;  %1899 = vperm.xlu0 %3474, %v3046_v34  }
 0x372   : > { %1927 = vperm.xlu0 %3474, %v3050_v35  }
 0x3c8   : > { %v1318_v36 = vpop.permute.xlu1 %1317  ;;  %v1290_v37 = vpop.permute.xlu0 %1289 }
 0x3c9   : > { %1320 = vst.msk [vmem:[#allocation2 + $0x4] sm:$0xe] %vm640_vm8, %v1318_v36 }
 0x3ca   : > { %1292 = vst.msk [vmem:[#allocation2] sm:$0xc] %vm607_vm7, %v1290_v37 }
 0x3d1   : > { %v1389_v38 = vld [vmem:[#allocation2] sm:$0xff] }
 0x3d2   : > { %1824 = vst [vmem:[#allocation2] sm:$0x7] %v3656_v1  ;;  %1834 = vst [vmem:[#allocation2 + $0x4] sm:$0x3] %v3656_v1  ;;  %v1394_v39 = vcombine.high %v1389_v38, %v1389_v38  ;;  %v1398_v42 = vpack.c.bf16 %v1389_v38, %v1389_v38 }
 0x3d4   : > { %v1399_v40 = vpack.c.bf16 %v1394_v39, %v1394_v39 }
 0x3d6   : > { %1733 = vmatprep.mubr.bf16.mxu0 %v1399_v40 }
 0x3d7   : > { %1734 = vmatmul.mubr.bf16.vlgmr.msra.gmra.mrb[8].mxu0 %v1398_v42 }
 0x3d8   : > { %3411 = vmatpush3.bf16.msra.mxu0 %v3553_v41  ;;  %3418 = vmatprep.mubr.msk.bf16.mxu0 %vm3657_vm0, %v3656_v1 }
 0x3d9   : > { %3412 = vmatprep.subr.bf16.mxu0 %v3656_v1  ;;  %v1380_v44 = vpop.permute.xlu1 %1379  ;;  %v1325_v45 = vpop.permute.xlu0 %1324 }
 0x3da   : > { %v1381_v46 = vrot.slane %v1380_v44, 5  ;;  %v1327_v47 = vmul.f32 %v1325_v45, %v4109_v58 }
 0x3dc   : > { %3413 = vmatpush3.bf16.msra.mxu0 %v3556_v43  ;;  %v1383_v49 = vmul.f32 %v1381_v46, %v4109_v58  ;;  %1328 = vst.msk [vmem:[#allocation2 + $0x8] sm:$0xf] %vm650_vm9, %v1327_v47  ;;  %v3002_v43 = vld [vmem:[%s4534_s9] ss:$0 sm:$0xff] }
 0x3dd   : > { %3414 = vmatprep.subr.bf16.mxu0 %v3656_v1  ;;  %1329 = vst.msk [vmem:[#allocation2 + $0xb] sm:$0x1] %vm624_vm2, %v3656_v1  ;;  %v1372_v50 = vpop.permute.xlu1 %1371  ;;  %v1342_v51 = vpop.permute.xlu0 %1341 }
 0x3de   : > { %v3001_v52 = vrot.slane %v1383_v49, 11  ;;  %1374 = vst.msk [vmem:[#allocation2 + $0xc] sm:$0x3] %vm591_vm5, %v1372_v50 }
 0x3df   : > { %1344 = vst.msk [vmem:[#allocation2 + $0x8] sm:$0x7] %vm668_vm10, %v1342_v51 }
 0x3e0   : > { %3415 = vmatpush3.bf16.msra.mxu0 %v3559_v48  ;;  %1388 = vst.msk [vmem:[#allocation2 + $0x10] sm:$0x1] %vm589_vm1, %v3001_v52 }
 0x3e1   : > { %3416 = vmatprep.subr.bf16.mxu0 %v3656_v1  ;;  %v1839_v33 = vpop.permute.xlu0 %1838  ;;  %v1829_v37 = vpop.permute.xlu1 %1828 }
 0x3e4   : > { %3417 = vmatpush3.bf16.msra.mxu0 %v3562_v53 }
 0x3e5   : > { %3252 = vmatprep.subr.bf16.mxu0 %v3564_v60  ;;  %v1852_v38 = vpop.permute.xlu0 %1851  ;;  %v1865_v39 = vpop.permute.xlu1 %1864  ;;  %v1840_v60 = vrot.slane %v1839_v33, 2 }
 0x3e6   : > { %v1390_v54 = vld [vmem:[#allocation2 + $0x8] sm:$0xff]  ;;  %v1866_v61 = vrot.slane %v1865_v39, 1 }
 0x3e7   : > { %1847 = vst [vmem:[#allocation2 + $0x8] sm:$0x1] %v3656_v1  ;;  %1860 = vst [vmem:[#allocation2 + $0xc] sm:$0x1] %v3656_v1  ;;  %v1395_v55 = vcombine.high %v1390_v54, %v1390_v54  ;;  %v1391_v56 = vld [vmem:[#allocation2 + $0x10] sm:$0xf]  ;;  %v1400_v59 = vpack.c.bf16 %v1390_v54, %v1390_v54 }
 0x3e8   : > { %v1402_v58 = vpack.c.bf16 %v1391_v56, %v1391_v56  ;;  %v3606_v39 = vld [vmem:[%s4535_s10 + $0x108] sm:$0xff]  }
 0x3e9   : > { %v1401_v57 = vpack.c.bf16 %v1395_v55, %v1395_v55  ;;  %v1886_v40 = vpop.permute.xlu0 %1885  ;;  %v1877_v41 = vpop.permute.xlu1 %1876 }
 0x3ea   : > { %3419 = vmatmul.mubr.msk.bf16.vlgmr.msra.gmra.mrb[12].mxu0 %vm1026_vm11, %v1402_v58  ;;  %v1830_v58 = vrot.slane %v1829_v37, 3 }
 0x3eb   : > { %1773 = vmatprep.mubr.bf16.mxu1 %v1401_v57  ;;  %3253 = vmatpush3.bf16.msra.mxu0 %v3566_v62  ;;  %v1853_v62 = vrot.slane %v1852_v38, 1 }
 0x3ec   : > { %1774 = vmatmul.mubr.bf16.vlgmr.msra.gmra.mrb[12].mxu1 %v1400_v59  ;;  %3254 = vmatprep.subr.bf16.mxu0 %v3568_v0 }
 0x3ed   : > { %3275 = vmatpush3.bf16.msra.mxu1 %v3567_v63  ;;  %v1900_v42 = vpop.permute.xlu0 %1899  ;;  %v1914_v56 = vpop.permute.xlu1 %1913  ;;  %v1887_v63 = vrot.slane %v1886_v40, 7  ;;  %v3607_v40 = vld [vmem:[%s4535_s10 + $0x188] sm:$0xff]  }
 0x3ee   : > { %3276 = vmatprep.subr.bf16.mxu1 %v3569_v2  ;;  %v1915_v0 = vrot.slane %v1914_v56, 6  ;;  %v1901_v2 = vrot.slane %v1900_v42, 7  ;;  %v3609_v42 = vld [vmem:[%s4535_s10 + $0x1d0] sm:$0xff]   ;;  %v3623_v56 = vld [vmem:[%s4535_s10 + $0x1a8] sm:$0xff]  }
 0x3ef   : > { %3255 = vmatpush3.bf16.msra.mxu0 %v3570_v3 }
 0x3f0   : > { %3256 = vmatprep.subr.bf16.mxu0 %v3572_v5 }
 0x3f1   : > { %3277 = vmatpush3.bf16.msra.mxu1 %v3571_v4  ;;  %v1928_v57 = vpop.permute.xlu0 %1927 }
 0x3f2   : > { %3278 = vmatprep.subr.bf16.mxu1 %v3573_v6  ;;  %v1929_v3 = vrot.slane %v1928_v57, 5  ;;  %v3624_v57 = vld [vmem:[%s4535_s10 + $0x170] sm:$0xff]  }
 0x3f3   : > { %3257 = vmatpush3.bf16.msra.mxu0 %v3574_v7 }
 0x3f4   : > { %3258 = vmatprep.subr.bf16.mxu0 %v3576_v9 }
 0x3f5   : > { %3279 = vmatpush3.bf16.msra.mxu1 %v3575_v8 }
 0x3f6   : > { %3280 = vmatprep.subr.bf16.mxu1 %v3577_v10 }
 0x3f7   : > { %3259 = vmatpush3.bf16.msra.mxu0 %v3578_v11 }
 0x3f8   : > { %3260 = vmatprep.subr.bf16.mxu0 %v3580_v13 }
 0x3f9   : > { %3281 = vmatpush3.bf16.msra.mxu1 %v3579_v12 }
 0x3fa   : > { %3282 = vmatprep.subr.bf16.mxu1 %v3581_v14 }
 0x3fb   : > { %3261 = vmatpush3.bf16.msra.mxu0 %v3582_v15 }
 0x3fc   : > { %3262 = vmatprep.subr.bf16.mxu0 %v3584_v17 }
 0x3fd   : > { %3283 = vmatpush3.bf16.msra.mxu1 %v3583_v16 }
 0x3fe   : > { %3284 = vmatprep.subr.bf16.mxu1 %v3585_v18 }
 0x3ff   : > { %3263 = vmatpush3.bf16.msra.mxu0 %v3586_v19 }
 0x400   : > { %3264 = vmatprep.subr.bf16.mxu0 %v3588_v21 }
 0x401   : > { %3285 = vmatpush3.bf16.msra.mxu1 %v3587_v20 }
 0x402   : > { %3286 = vmatprep.subr.bf16.mxu1 %v3589_v22 }
 0x403   : > { %3265 = vmatpush3.bf16.msra.mxu0 %v3590_v23 }
 0x404   : > { %3266 = vmatprep.subr.bf16.mxu0 %v3592_v25 }
 0x405   : > { %3287 = vmatpush3.bf16.msra.mxu1 %v3591_v24 }
 0x406   : > { %3288 = vmatprep.subr.bf16.mxu1 %v3593_v26 }
 0x407   : > { %3267 = vmatpush3.bf16.msra.mxu0 %v3594_v27 }
 0x408   : > { %3296 = vmatprep.subr.bf16.mxu0 %v3598_v29 }
 0x409   : > { %3289 = vmatpush3.bf16.msra.mxu1 %v3595_v28 }
 0x40a   : > { %3318 = vmatprep.subr.bf16.mxu1 %v3599_v30 }
 0x4aa   : > { %v3219_v31 = vpop.f32.mrb[8].mxu0 }
 0x4ab   : > { %v3220_v32 = vpop.f32.mrb[9].mxu0 }
 0x4ac   : > { %v3221_v34 = vadd.f32 %v3220_v32, %v3219_v31  ;;  %v3222_v35 = vpop.f32.mrb[10].mxu0  ;;  %v3600_v31 = vld [vmem:[%s4535_s10 + $0x100] sm:$0xff]  }
 0x4ad   : > { %v3223_v36 = vpop.f32.mrb[11].mxu0  ;;  %v3601_v32 = vld [vmem:[%s4535_s10 + $0x180] sm:$0xff]   ;;  %v3604_v35 = vld [vmem:[%s4535_s10 + $0x148] sm:$0xff]  }
 0x4ae   : > { %v1736_v49 = vadd.f32 %v3221_v34, %v3002_v43  ;;  %v3605_v36 = vld [vmem:[%s4535_s10 + $0x1c8] sm:$0xff]   ;;  %v3610_v43 = vld [vmem:[%s4535_s10 + $0x110] sm:$0xff]  }
 0x4bd   : > { %v1815_v44 = vpop.f32.mrb[12].mxu0 }
 0x4be   : > { %v3420_v46 = vpop.f32.mrb[13].mxu0 }
 0x4bf   : > { %v3241_v45 = vpop.f32.mrb[12].mxu1  ;;  %v1818_v48 = vpop.f32.mrb[14].mxu0  ;;  %v3613_v46 = vld [vmem:[%s4535_s10 + $0x1d8] sm:$0xff]  }
 0x4c0   : > { %v3242_v47 = vpop.f32.mrb[13].mxu1  ;;  %v3421_v52 = vpop.f32.mrb[15].mxu0  ;;  %v3615_v48 = vld [vmem:[%s4535_s10 + $0x198] sm:$0xff]  }
 0x4c1   : > { %v3243_v50 = vadd.f32 %v3242_v47, %v3241_v45  ;;  %v3244_v51 = vpop.f32.mrb[14].mxu1  ;;  %v3612_v45 = vld [vmem:[%s4535_s10 + $0x158] sm:$0xff]   ;;  %v3619_v52 = vld [vmem:[%s4535_s10 + $0x1a0] sm:$0xff]  }
 0x4c2   : > { %v3245_v53 = vpop.f32.mrb[15].mxu1  ;;  %v3614_v47 = vld [vmem:[%s4535_s10 + $0x118] sm:$0xff]   ;;  %v3618_v51 = vld [vmem:[%s4535_s10 + $0x120] sm:$0xff]  }
 0x4c3   : > { %v1776_v54 = vadd.f32 %v3243_v50, %v1736_v49  ;;  %v3616_v49 = vld [vmem:[%s4535_s10 + $0x160] sm:$0xff]   ;;  %v3620_v53 = vld [vmem:[%s4535_s10 + $0x168] sm:$0xff]  }
 0x4c4   : > { %v3617_v50 = vld [vmem:[%s4535_s10 + $0x1e0] sm:$0xff]  }
 0x4c5   : > { %v1816_v55 = vadd.f32 %v1815_v44, %v1776_v54  ;;  %v3611_v44 = vld [vmem:[%s4535_s10 + $0x190] sm:$0xff]   ;;  %v3621_v54 = vld [vmem:[%s4535_s10 + $0x1e8] sm:$0xff]  }
 0x4c7   : > { %vm1821_vm14 = vcmp.gt.f32.partialorder %v1816_v55, 0.0  ;;  %v1822_v59 = vmul.f32 0.1, %v1816_v55 }
 0x4c9   : > { %v1823_v4 = vsel %vm1821_vm14, %v1816_v55, %v1822_v59  ;;  %v3622_v55 = vld [vmem:[%s4535_s10 + $0x128] sm:$0xff]   ;;  %v3626_v59 = vld [vmem:[%s4535_s10 + $0x130] sm:$0xff]  }
 0x4ca   : > { %v1832_v5 = vmul.f32 %v1830_v58, %v1823_v4  ;;  %v1842_v6 = vmul.f32 %v1840_v60, %v1823_v4  ;;  %v1855_v7 = vmul.f32 %v1853_v62, %v1823_v4  ;;  %v1868_v8 = vmul.f32 %v1866_v61, %v1823_v4  ;;  %v3625_v58 = vld [vmem:[%s4535_s10 + $0x1f0] sm:$0xff]   ;;  %v3628_v61 = vld [vmem:[%s4535_s10 + $0x178] sm:$0xff]  }
 0x4cb   : > { %v1879_v9 = vmul.f32 %v1877_v41, %v1823_v4  ;;  %v1889_v10 = vmul.f32 %v1887_v63, %v1823_v4  ;;  %v1903_v11 = vmul.f32 %v1901_v2, %v1823_v4  ;;  %v1917_v12 = vmul.f32 %v1915_v0, %v1823_v4  ;;  %v3608_v41 = vld [vmem:[%s4535_s10 + $0x150] sm:$0xff]   ;;  %v3629_v62 = vld [vmem:[%s4535_s10 + $0x1f8] sm:$0xff]   ;;  %v3632_v2 = vld [vmem:[%s4535_s10 + $0x200] sm:$0xff]  }
 0x4cc   : > { %1833 = vst [vmem:[#allocation2 + $0x3] sm:$0x1] %v1832_v5  ;;  %v1844_v13 = vrot.slane %v1842_v6, 6  ;;  %v1857_v14 = vrot.slane %v1855_v7, 7  ;;  %v1870_v15 = vrot.slane %v1868_v8, 7  ;;  %v1931_v16 = vmul.f32 %v1929_v3, %v1823_v4  ;;  %v3627_v60 = vld [vmem:[%s4535_s10 + $0x1b0] sm:$0xff]  }
 0x4cd   : > { %v3045_v17 = vrot.slane %v1889_v10, 9  ;;  %v3047_v18 = vrot.slane %v1903_v11, 9  ;;  %v3049_v19 = vrot.slane %v1917_v12, 10  ;;  %1880 = vst [vmem:[#allocation2 + $0x10] sm:$0xf] %v1879_v9  ;;  %v3630_v63 = vld [vmem:[%s4535_s10 + $0x138] sm:$0xff]  }
 0x4ce   : > { %v3051_v20 = vrot.slane %v1931_v16, 11  ;;  %1846 = vst [vmem:[#allocation2 + $0x4] sm:$0xc] %v1844_v13  ;;  %1859 = vst [vmem:[#allocation2 + $0x8] sm:$0xe] %v1857_v14  ;;  %v3631_v0 = vld [vmem:[%s4535_s10 + $0x1b8] sm:$0xff]  }
 0x4cf   : > { %1872 = vst [vmem:[#allocation2 + $0xc] sm:$0xe] %v1870_v15  ;;  %1894 = vst [vmem:[#allocation2 + $0x14] sm:$0x7] %v3045_v17  ;;  %v3633_v5 = vld [vmem:[%s4535_s10 + $0x208] sm:$0xff]   ;;  %v3634_v6 = vld [vmem:[%s4535_s10 + $0x210] sm:$0xff]  }
 0x4d0   : > { %1908 = vst [vmem:[#allocation2 + $0x18] sm:$0x7] %v3047_v18  ;;  %1922 = vst [vmem:[#allocation2 + $0x1c] sm:$0x3] %v3049_v19  ;;  %v3635_v7 = vld [vmem:[%s4535_s10 + $0x218] sm:$0xff]   ;;  %v3636_v8 = vld [vmem:[%s4535_s10 + $0x220] sm:$0xff]  }
 0x4d1   : > { %1936 = vst [vmem:[#allocation2 + $0x20] sm:$0x1] %v3051_v20  ;;  %v3637_v9 = vld [vmem:[%s4535_s10 + $0x228] sm:$0xff]   ;;  %v3638_v10 = vld [vmem:[%s4535_s10 + $0x230] sm:$0xff]   ;;  %v3639_v11 = vld [vmem:[%s4535_s10 + $0x238] sm:$0xff]  }
 0x4d2   : > { %v3640_v14 = vld [vmem:[%s4537_s12] sm:$0xff]   ;;  %v3641_v15 = vld [vmem:[%s4537_s12 + $0x8] sm:$0xff]   ;;  %v3642_v16 = vld [vmem:[%s4537_s12 + $0x10] sm:$0xff]  }
 0x4d3   : > { %v3643_v17 = vld [vmem:[%s4537_s12 + $0x18] sm:$0xff]   ;;  %v3644_v18 = vld [vmem:[%s4537_s12 + $0x20] sm:$0xff]   ;;  %v3645_v19 = vld [vmem:[%s4537_s12 + $0x28] sm:$0xff]  }
 0x4d4   : > { %v3646_v20 = vld [vmem:[%s4537_s12 + $0x30] sm:$0xff]  }
 0x4d5   : > { %v1937_v21 = vld [vmem:[#allocation2] sm:$0xff] }
 0x4d6   : > { %v1938_v22 = vld [vmem:[#allocation2 + $0x8] sm:$0xff]  ;;  %v1946_v23 = vcombine.high %v1937_v21, %v1937_v21  ;;  %v4342_v25 = vld [vmem:[#allocation2 + $0x10] sm:$0xff]  ;;  %v1954_v33 = vpack.c.bf16 %v1937_v21, %v1937_v21  ;;  %v3647_v21 = vld [vmem:[%s4537_s12 + $0x38] sm:$0xff]  }
 0x4d7   : > { %v1947_v24 = vcombine.high %v1938_v22, %v1938_v22  ;;  %v4344_v26 = vld [vmem:[#allocation2 + $0x18] sm:$0xff]  ;;  %v1948_v27 = vcombine.high %v4342_v25, %v4342_v25  ;;  %v1956_v34 = vpack.c.bf16 %v1938_v22, %v1938_v22  ;;  %v1958_v3 = vpack.c.bf16 %v4342_v25, %v4342_v25 }
 0x4d8   : > { %v1949_v28 = vcombine.high %v4344_v26, %v4344_v26  ;;  %v1955_v29 = vpack.c.bf16 %v1946_v23, %v1946_v23  ;;  %v1960_v4 = vpack.c.bf16 %v4344_v26, %v4344_v26  ;;  %v1941_v12 = vld [vmem:[#allocation2 + $0x20] sm:$0xf] }
 0x4d9   : > { %v1957_v30 = vpack.c.bf16 %v1947_v24, %v1947_v24  ;;  %v1959_v37 = vpack.c.bf16 %v1948_v27, %v1948_v27  ;;  %v1962_v13 = vpack.c.bf16 %v1941_v12, %v1941_v12  ;;  %v3052_v24 = vld [vmem:[%s4536_s11] ss:$0 sm:$0xff] }
 0x4da   : > { %2578 = vmatprep.mubr.bf16.mxu0 %v1955_v29  ;;  %v1961_v38 = vpack.c.bf16 %v1949_v28, %v1949_v28 }
 0x4db   : > { %2618 = vmatprep.mubr.bf16.mxu1 %v1957_v30  ;;  %2579 = vmatmul.mubr.bf16.vlgmr.msra.gmra.mrb[16].mxu0 %v1954_v33 }
 0x4dc   : > { %2619 = vmatmul.mubr.bf16.vlgmr.msra.gmra.mrb[16].mxu1 %v1956_v34  ;;  %3297 = vmatpush3.bf16.msra.mxu0 %v3600_v31 }
 0x4dd   : > { %3319 = vmatpush3.bf16.msra.mxu1 %v3601_v32  ;;  %2658 = vmatprep.mubr.bf16.mxu0 %v1959_v37 }
 0x4de   : > { %2698 = vmatprep.mubr.bf16.mxu1 %v1961_v38  ;;  %3298 = vmatprep.subr.bf16.mxu0 %v3604_v35 }
 0x4df   : > { %3320 = vmatprep.subr.bf16.mxu1 %v3605_v36 }
 0x4e0   : > { %3299 = vmatpush3.bf16.msra.mxu0 %v3606_v39 }
 0x4e1   : > { %3321 = vmatpush3.bf16.msra.mxu1 %v3607_v40  ;;  %3300 = vmatprep.subr.bf16.mxu0 %v3608_v41 }
 0x4e2   : > { %3322 = vmatprep.subr.bf16.mxu1 %v3609_v42 }
 0x4e4   : > { %3301 = vmatpush3.bf16.msra.mxu0 %v3610_v43 }
 0x4e5   : > { %3323 = vmatpush3.bf16.msra.mxu1 %v3611_v44  ;;  %3302 = vmatprep.subr.bf16.mxu0 %v3612_v45 }
 0x4e6   : > { %3324 = vmatprep.subr.bf16.mxu1 %v3613_v46 }
 0x4e8   : > { %3303 = vmatpush3.bf16.msra.mxu0 %v3614_v47 }
 0x4e9   : > { %3325 = vmatpush3.bf16.msra.mxu1 %v3615_v48  ;;  %3304 = vmatprep.subr.bf16.mxu0 %v3616_v49 }
 0x4ea   : > { %3326 = vmatprep.subr.bf16.mxu1 %v3617_v50 }
 0x4ec   : > { %3305 = vmatpush3.bf16.msra.mxu0 %v3618_v51 }
 0x4ed   : > { %3327 = vmatpush3.bf16.msra.mxu1 %v3619_v52  ;;  %3306 = vmatprep.subr.bf16.mxu0 %v3620_v53 }
 0x4ee   : > { %3328 = vmatprep.subr.bf16.mxu1 %v3621_v54  ;;  %v3125_v54 = vld [vmem:[%s4538_s13] ss:$0 sm:$0xff] }
 0x4f0   : > { %3307 = vmatpush3.bf16.msra.mxu0 %v3622_v55 }
 0x4f1   : > { %3329 = vmatpush3.bf16.msra.mxu1 %v3623_v56  ;;  %3308 = vmatprep.subr.bf16.mxu0 %v3624_v57 }
 0x4f2   : > { %3330 = vmatprep.subr.bf16.mxu1 %v3625_v58 }
 0x4f4   : > { %3309 = vmatpush3.bf16.msra.mxu0 %v3626_v59 }
 0x4f5   : > { %3331 = vmatpush3.bf16.msra.mxu1 %v3627_v60  ;;  %3310 = vmatprep.subr.bf16.mxu0 %v3628_v61 }
 0x4f6   : > { %3332 = vmatprep.subr.bf16.mxu1 %v3629_v62 }
 0x4f8   : > { %3311 = vmatpush3.bf16.msra.mxu0 %v3630_v63 }
 0x4f9   : > { %3333 = vmatpush3.bf16.msra.mxu1 %v3631_v0  ;;  %3422 = vmatprep.subr.bf16.mxu0 %v3656_v1 }
 0x4fa   : > { %3442 = vmatprep.subr.bf16.mxu1 %v3656_v1 }
 0x4fb   : > { %2659 = vmatmul.mubr.bf16.vlgmr.msra.gmra.mrb[20].mxu0 %v1958_v3 }
 0x4fc   : > { %2699 = vmatmul.mubr.bf16.vlgmr.msra.gmra.mrb[20].mxu1 %v1960_v4  ;;  %3423 = vmatpush3.bf16.msra.mxu0 %v3632_v2 }
 0x4fd   : > { %3438 = vmatprep.mubr.msk.bf16.mxu0 %vm3657_vm0, %v3656_v1  ;;  %3424 = vmatprep.subr.bf16.mxu0 %v3656_v1 }
 0x4fe   : > { %3458 = vmatprep.mubr.msk.bf16.mxu1 %vm3657_vm0, %v3656_v1  ;;  %3443 = vmatpush3.bf16.msra.mxu1 %v3640_v14 }
 0x4ff   : > { %3444 = vmatprep.subr.bf16.mxu1 %v3656_v1 }
 0x500   : > { %3425 = vmatpush3.bf16.msra.mxu0 %v3633_v5 }
 0x501   : > { %3426 = vmatprep.subr.bf16.mxu0 %v3656_v1 }
 0x502   : > { %3445 = vmatpush3.bf16.msra.mxu1 %v3641_v15 }
 0x503   : > { %3446 = vmatprep.subr.bf16.mxu1 %v3656_v1 }
 0x504   : > { %3427 = vmatpush3.bf16.msra.mxu0 %v3634_v6 }
 0x505   : > { %3428 = vmatprep.subr.bf16.mxu0 %v3656_v1 }
 0x506   : > { %3447 = vmatpush3.bf16.msra.mxu1 %v3642_v16 }
 0x507   : > { %3448 = vmatprep.subr.bf16.mxu1 %v3656_v1 }
 0x508   : > { %3429 = vmatpush3.bf16.msra.mxu0 %v3635_v7 }
 0x509   : > { %3430 = vmatprep.subr.bf16.mxu0 %v3656_v1 }
 0x50a   : > { %3449 = vmatpush3.bf16.msra.mxu1 %v3643_v17 }
 0x50b   : > { %3450 = vmatprep.subr.bf16.mxu1 %v3656_v1 }
 0x50c   : > { %3431 = vmatpush3.bf16.msra.mxu0 %v3636_v8 }
 0x50d   : > { %3432 = vmatprep.subr.bf16.mxu0 %v3656_v1 }
 0x50e   : > { %3451 = vmatpush3.bf16.msra.mxu1 %v3644_v18 }
 0x50f   : > { %3452 = vmatprep.subr.bf16.mxu1 %v3656_v1 }
 0x510   : > { %3433 = vmatpush3.bf16.msra.mxu0 %v3637_v9 }
 0x511   : > { %3434 = vmatprep.subr.bf16.mxu0 %v3656_v1 }
 0x512   : > { %3453 = vmatpush3.bf16.msra.mxu1 %v3645_v19 }
 0x513   : > { %3454 = vmatprep.subr.bf16.mxu1 %v3656_v1 }
 0x514   : > { %3435 = vmatpush3.bf16.msra.mxu0 %v3638_v10 }
 0x515   : > { %3436 = vmatprep.subr.bf16.mxu0 %v3656_v1 }
 0x516   : > { %3455 = vmatpush3.bf16.msra.mxu1 %v3646_v20 }
 0x517   : > { %3456 = vmatprep.subr.bf16.mxu1 %v3656_v1 }
 0x518   : > { %3437 = vmatpush3.bf16.msra.mxu0 %v3639_v11 }
 0x51a   : > { %3457 = vmatpush3.bf16.msra.mxu1 %v3647_v21 }
 0x51b   : > { %3439 = vmatmul.mubr.bf16.vlgmr.msra.gmra.mrb[24].mxu0 %v1962_v13 }
 0x5ae   : > { %v3268_v22 = vpop.f32.mrb[16].mxu0 }
 0x5af   : > { %v3290_v23 = vpop.f32.mrb[16].mxu1  ;;  %v3269_v25 = vpop.f32.mrb[17].mxu0 }
 0x5b0   : > { %v3291_v26 = vpop.f32.mrb[17].mxu1  ;;  %v3270_v27 = vadd.f32 %v3269_v25, %v3268_v22  ;;  %v3271_v29 = vpop.f32.mrb[18].mxu0 }
 0x5b1   : > { %v3292_v28 = vadd.f32 %v3291_v26, %v3290_v23  ;;  %v3293_v30 = vpop.f32.mrb[18].mxu1  ;;  %v3272_v31 = vpop.f32.mrb[19].mxu0 }
 0x5b2   : > { %v3294_v32 = vpop.f32.mrb[19].mxu1  ;;  %v2581_v1 = vadd.f32 %v3270_v27, %v3052_v24 }
 0x5b4   : > { %v2621_v33 = vadd.f32 %v3292_v28, %v2581_v1 }
 0x5ce   : > { %v3312_v34 = vpop.f32.mrb[20].mxu0 }
 0x5cf   : > { %v3334_v35 = vpop.f32.mrb[20].mxu1  ;;  %v3313_v36 = vpop.f32.mrb[21].mxu0 }
 0x5d0   : > { %v3335_v37 = vpop.f32.mrb[21].mxu1  ;;  %v3314_v38 = vadd.f32 %v3313_v36, %v3312_v34  ;;  %v3315_v40 = vpop.f32.mrb[22].mxu0 }
 0x5d1   : > { %v3336_v39 = vadd.f32 %v3335_v37, %v3334_v35  ;;  %v3337_v41 = vpop.f32.mrb[22].mxu1  ;;  %v3316_v42 = vpop.f32.mrb[23].mxu0 }
 0x5d2   : > { %v3338_v43 = vpop.f32.mrb[23].mxu1  ;;  %v2661_v44 = vadd.f32 %v3314_v38, %v2621_v33 }
 0x5d4   : > { %v2701_v45 = vadd.f32 %v3336_v39, %v2661_v44 }
 0x5ee   : > { %v2740_v46 = vpop.f32.mrb[24].mxu0 }
 0x5ef   : > { %v2741_v47 = vadd.f32 %v2740_v46, %v2701_v45  ;;  %v3440_v48 = vpop.f32.mrb[25].mxu0 }
 0x5f0   : > { %v2743_v49 = vpop.f32.mrb[26].mxu0 }
 0x5f1   : > { %vm2746_vm15 = vcmp.gt.f32.partialorder %v2741_v47, 0.0  ;;  %v2747_v50 = vmul.f32 0.1, %v2741_v47  ;;  %v3441_v51 = vpop.f32.mrb[27].mxu0 }
 0x5f3   : > { %v2748_v52 = vsel %vm2746_vm15, %v2741_v47, %v2747_v50 }
 0x5f4   : > { %v2749_v53 = vpack.c.bf16 %v2748_v52, %v2748_v52 }
 0x5f6   : > { %3459 = vmatmul.mubr.bf16.vlgmr.msra.gmra.mrb[24].mxu1 %v2749_v53 }
 0x6c9   : > { %v2855_v55 = vpop.f32.mrb[24].mxu1 }
 0x6ca   : > { %v2856_v56 = vadd.f32 %v3125_v54, %v2855_v55  ;;  %v3460_v57 = vpop.f32.mrb[25].mxu1 }
 0x6cb   : > { %v2858_v58 = vpop.f32.mrb[26].mxu1 }
 0x6cc   : > { %2861 = vst [vmem:[%s462_s28] sm:$0xf] %v2856_v56  ;;  %v3461_v59 = vpop.f32.mrb[27].mxu1 }
 0x6cd PF: > { %s24_s29 = sadd.s32 1, %s3654_s29  }
 0x6ce   : > { %p21_p4 = scmp.ge.s32.totalorder %s24_s29, 4  }
 0x6d0   :  { %23 = sbr.rel (!%p21_p4) target bundleno = 1 (0x1), region = 114 }

</bundles_post_ra>
